<compile_context>
chip_gen: v5e
topology: v5e:2x2
jax: 0.10.0
libtpu: 0.0.40
codegen_flags: <defaults>
</compile_context>

<pallas_src>
import functools

import numpy as np
import jax
import jax.numpy as jnp
from jax.experimental import pallas as pl
from jax.experimental.pallas import tpu as pltpu

# ----------------------------------------------------------------------------
# Synthetic mini-YOLOv3 cfg (replaces the .cfg file read by parsecfg).
# ----------------------------------------------------------------------------
CFG = """
[net]
height=16
width=16
channels=3

[convolutional]
batch_normalize=1
filters=8
size=3
stride=1
pad=1
activation=leaky

[convolutional]
batch_normalize=1
filters=16
size=3
stride=2
pad=1
activation=leaky

[convolutional]
batch_normalize=1
filters=8
size=1
stride=1
pad=1
activation=leaky

[convolutional]
batch_normalize=1
filters=16
size=3
stride=1
pad=1
activation=leaky

[shortcut]
from=-3
activation=linear

[convolutional]
filters=21
size=1
stride=1
pad=1
activation=linear

[yolo]
mask=0,1,2
anchors=2,3, 4,5, 6,7, 8,9, 10,11, 12,13
classes=2
num=6

[route]
layers=-3

[convolutional]
batch_normalize=1
filters=8
size=1
stride=1
pad=1
activation=leaky

[upsample]
stride=2

[route]
layers=-1,-10

[convolutional]
batch_normalize=1
filters=16
size=3
stride=1
pad=1
activation=leaky

[convolutional]
filters=21
size=1
stride=1
pad=1
activation=linear

[yolo]
mask=3,4,5
anchors=2,3, 4,5, 6,7, 8,9, 10,11, 12,13
classes=2
num=6
"""


def parsecfg_string(cfg_str):
    lines = [ln.strip() for ln in cfg_str.split("\n")]
    lines = [ln for ln in lines if len(ln) > 0 and ln[0] != "#"]
    block, blocks = {}, []
    for line in lines:
        if line[0] == "[":
            if len(block) != 0:
                blocks.append(block)
                block = {}
            block["type"] = line[1:-1].strip()
        else:
            k, v = line.split("=")
            block[k.strip()] = v.strip()
    blocks.append(block)
    return blocks


# ----------------------------------------------------------------------------
# Pallas kernels
# ----------------------------------------------------------------------------
_VMEM = pl.BlockSpec(memory_space=pltpu.MemorySpace.VMEM)


def conv_bn_leaky_kernel(w_ref, p_ref, g_ref, b_ref, o_ref, *, leaky):
    # Fused conv hot path: im2col GEMM on the MXU (OC,K)@(K,M), then
    # train-mode BatchNorm with batch statistics over the FULL M = N*OH*OW
    # axis (the whole activation is resident in this single VMEM block --
    # do NOT add an M-tiled grid here without a cross-tile stats pass),
    # then LeakyReLU.  Output (OC, M): M on the lane axis -> dense vst.
    y = jnp.dot(w_ref[...], p_ref[...], preferred_element_type=jnp.float32)
    mean = jnp.mean(y, axis=1, keepdims=True)
    var = jnp.mean((y - mean) ** 2, axis=1, keepdims=True)
    y = (y - mean) * jax.lax.rsqrt(var + 1e-5) * g_ref[...] + b_ref[...]
    if leaky:
        y = jnp.where(y > 0, y, 0.1 * y)
    o_ref[...] = y


def conv_bias_kernel(w_ref, p_ref, bias_ref, o_ref, *, leaky):
    # Fused conv + bias (+ optional LeakyReLU) for the non-BN layers.
    y = jnp.dot(w_ref[...], p_ref[...], preferred_element_type=jnp.float32)
    y = y + bias_ref[...]
    if leaky:
        y = jnp.where(y > 0, y, 0.1 * y)
    o_ref[...] = y


def add_kernel(a_ref, b_ref, o_ref):
    o_ref[...] = a_ref[...] + b_ref[...]


def yolo_kernel(p_ref, off_ref, anc_ref, o_ref, *, stride):
    # predict_transform in layout (N, bb, M): attributes on sublanes, boxes
    # (gs*gs*na) on the lane axis.  exp() is only applied where it is used
    # (w/h rows), via masking-to-zero -> no overflow on large logits.
    p = p_ref[...]
    attr = jax.lax.broadcasted_iota(jnp.int32, p.shape, 1)
    is_xy = attr < 2
    is_wh = jnp.logical_and(attr >= 2, attr < 4)
    sig = jax.nn.sigmoid(p)
    ex = jnp.exp(jnp.where(is_wh, p, 0.0))
    xy = (sig + off_ref[...]) * stride
    wh = ex * anc_ref[...]
    o_ref[...] = jnp.where(is_xy, xy, jnp.where(is_wh, wh, sig))


# ----------------------------------------------------------------------------
# Pallas wrappers
# ----------------------------------------------------------------------------
def pallas_conv(patches, w2d, p, leaky):
    # patches: (K, M) with M = N*OH*OW, w2d: (OC, K) -> out (OC, M)
    oc = w2d.shape[0]
    m = patches.shape[1]
    out_shape = jax.ShapeDtypeStruct((oc, m), jnp.float32)
    if "gamma" in p:
        return pl.pallas_call(
            functools.partial(conv_bn_leaky_kernel, leaky=leaky),
            out_shape=out_shape,
            in_specs=[_VMEM, _VMEM, _VMEM, _VMEM],
            out_specs=_VMEM,
        )(w2d, patches, p["gamma"].reshape(oc, 1), p["beta"].reshape(oc, 1))
    return pl.pallas_call(
        functools.partial(conv_bias_kernel, leaky=leaky),
        out_shape=out_shape,
        in_specs=[_VMEM, _VMEM, _VMEM],
        out_specs=_VMEM,
    )(w2d, patches, p["bias"].reshape(oc, 1))


def pallas_add(a, b):
    # Lane-dense elementwise add: reshape to (-1, 128) when possible.
    shape = a.shape
    last = 128 if (a.size % 128 == 0) else shape[-1]
    a2 = a.reshape(-1, last)
    b2 = b.reshape(-1, last)
    out = pl.pallas_call(
        add_kernel,
        out_shape=jax.ShapeDtypeStruct(a2.shape, jnp.float32),
        in_specs=[_VMEM, _VMEM],
        out_specs=_VMEM,
    )(a2, b2)
    return out.reshape(shape)


# ----------------------------------------------------------------------------
# Glue: im2col (fused by XLA under jit), YOLO transform, params, forward
# ----------------------------------------------------------------------------
def im2col_nchw(x, ksize, stride, pad):
    # x: (N, C, H, W) -> patches (C*k*k, N*OH*OW); K ordering (ic, kh, kw)
    # matches PyTorch conv weight.reshape(OC, -1).
    n, c, h, w = x.shape
    if pad:
        x = jnp.pad(x, ((0, 0), (0, 0), (pad, pad), (pad, pad)))
    oh = (h + 2 * pad - ksize) // stride + 1
    ow = (w + 2 * pad - ksize) // stride + 1
    cols = []
    for i in range(ksize):
        for j in range(ksize):
            cols.append(x[:, :, i : i + stride * oh : stride, j : j + stride * ow : stride])
    pat = jnp.stack(cols, axis=2)                       # (n, c, k*k, oh, ow)
    pat = pat.transpose(1, 2, 0, 3, 4).reshape(c * ksize * ksize, n * oh * ow)
    return pat, oh, ow


_YOLO_CONST_CACHE = {}


def yolo_constants(gs, na, bb, anchors):
    # Precomputed (and cached) grid offsets / anchor tensors in the
    # (1, bb, gs*gs*na) kernel layout.  Box m = (row*gs + col)*na + a.
    key = (gs, na, bb, tuple(anchors))
    if key not in _YOLO_CONST_CACHE:
        m = np.arange(gs * gs * na)
        col = (m // na) % gs
        row = m // (na * gs)
        off = np.zeros((1, bb, gs * gs * na), np.float32)
        off[0, 0, :] = col
        off[0, 1, :] = row
        anc = np.ones((1, bb, gs * gs * na), np.float32)
        aw = np.array([a[0] for a in anchors], np.float32)
        ah = np.array([a[1] for a in anchors], np.float32)
        anc[0, 2, :] = np.tile(aw, gs * gs)
        anc[0, 3, :] = np.tile(ah, gs * gs)
        _YOLO_CONST_CACHE[key] = (jnp.asarray(off), jnp.asarray(anc))
    return _YOLO_CONST_CACHE[key]


def predict_transform(x_nchw, inp_dim, anchors, num_classes):
    n, ch, gs, _ = x_nchw.shape
    stride = inp_dim // gs
    na = len(anchors)
    bb = 5 + num_classes
    assert ch == na * bb
    # (N, na*bb, gs, gs) -> (N, bb, gs*gs*na): boxes on the lane axis.
    p = x_nchw.reshape(n, na, bb, gs, gs).transpose(0, 2, 3, 4, 1)
    p = p.reshape(n, bb, gs * gs * na)
    off, anc = yolo_constants(gs, na, bb, anchors)
    out = pl.pallas_call(
        functools.partial(yolo_kernel, stride=float(stride)),
        out_shape=jax.ShapeDtypeStruct(p.shape, jnp.float32),
        in_specs=[_VMEM, _VMEM, _VMEM],
        out_specs=_VMEM,
    )(p, off, anc)
    # Final detection layout (N, gs*gs*na, 5+C), same as the PyTorch reference.
    return out.transpose(0, 2, 1)


def create_params(blocks, key):
    prev_filters = 3
    output_filters = []
    filters = prev_filters
    params = {}
    for index, blk in enumerate(blocks[1:]):
        t = blk["type"]
        if t == "convolutional":
            bn = int(blk.get("batch_normalize", 0))
            filters = int(blk["filters"])
            ksize = int(blk["size"])
            key, kw, kg, kb = jax.random.split(key, 4)
            # PyTorch weight layout (OC, IC, KH, KW) -> (OC, IC*KH*KW) GEMM lhs
            w = 0.1 * jax.random.normal(
                kw, (filters, prev_filters, ksize, ksize), jnp.float32
            )
            p = {"w2d": w.reshape(filters, prev_filters * ksize * ksize)}
            if bn:
                p["gamma"] = 1.0 + 0.1 * jax.random.normal(kg, (filters,), jnp.float32)
                p["beta"] = 0.1 * jax.random.normal(kb, (filters,), jnp.float32)
            else:
                p["bias"] = 0.1 * jax.random.normal(kb, (filters,), jnp.float32)
            params[index] = p
        elif t == "route":
            layers = [int(v) for v in blk["layers"].split(",")]
            start = layers[0]
            end = layers[1] if len(layers) > 1 else 0
            if start > 0:
                start -= index
            if end > 0:
                end -= index
            if end < 0:
                filters = output_filters[index + start] + output_filters[index + end]
            else:
                filters = output_filters[index + start]
        # upsample / shortcut / yolo: `filters` carries over (as in create_modules)
        prev_filters = filters
        output_filters.append(filters)
    return params


class DarknetPallas:
    def __init__(self, cfg_string, key):
        self.blocks = parsecfg_string(cfg_string)
        self.net_info = self.blocks[0]
        self.params = create_params(self.blocks, key)
        # Jit the whole forward: one XLA program, all glue fused around the
        # Pallas kernels (removes per-op dispatch + HBM round trips).
        self._forward_jit = jax.jit(self._forward)

    def _conv(self, params, x, idx, module):
        p = params[idx]
        ksize = int(module["size"])
        stride = int(module["stride"])
        pad = (ksize - 1) // 2 if int(module["pad"]) else 0
        n = x.shape[0]
        patches, oh, ow = im2col_nchw(x, ksize, stride, pad)
        leaky = module.get("activation", "linear") == "leaky"
        y = pallas_conv(patches, p["w2d"], p, leaky)        # (OC, N*oh*ow)
        oc = p["w2d"].shape[0]
        return y.reshape(oc, n, oh, ow).transpose(1, 0, 2, 3)  # -> NCHW

    def _forward(self, params, x_nchw):
        x = x_nchw.astype(jnp.float32)
        modules = self.blocks[1:]
        outputs = {}
        detections = None
        for idx, module in enumerate(modules):
            t = module["type"]
            if t == "convolutional":
                x = self._conv(params, x, idx, module)
            elif t == "upsample":
                # nearest-neighbor x2 (pure data movement -> JAX glue under jit)
                x = jnp.repeat(jnp.repeat(x, 2, axis=2), 2, axis=3)
            elif t == "route":
                layers = [int(v) for v in str(module["layers"]).split(",")]
                if layers[0] > 0:
                    layers[0] -= idx
                if len(layers) == 1:
                    x = outputs[idx + layers[0]]
                else:
                    if layers[1] > 0:
                        layers[1] -= idx
                    # torch.cat along channel dim (dim=1, NCHW)
                    x = jnp.concatenate(
                        [outputs[idx + layers[0]], outputs[idx + layers[1]]], axis=1
                    )
            elif t == "shortcut":
                f = int(module["from"])
                x = pallas_add(outputs[idx - 1], outputs[idx + f])
            elif t == "yolo":
                mask = [int(m) for m in module["mask"].split(",")]
                anchors = [int(a) for a in module["anchors"].split(",")]
                anchors = [(anchors[i], anchors[i + 1]) for i in range(0, len(anchors), 2)]
                anchors = [anchors[m] for m in mask]
                inp_dim = int(self.net_info["height"])
                num_classes = int(module["classes"])
                x = predict_transform(x, inp_dim, anchors, num_classes)
                detections = (
                    x if detections is None else jnp.concatenate([detections, x], axis=1)
                )
            outputs[idx] = x
        return detections

    def forward(self, x_nchw, CUDA=False):
        return self._forward_jit(self.params, x_nchw)


# TODO(synk): Darknet.load_weights reads a .weights file; not applicable here —
# parameters are initialized deterministically in-script instead.
# TODO(synk): at real YOLO resolutions, reintroduce an M-tiled ("parallel")
# GEMM grid with VMEM-sized tiles (and bf16 operands on v6e/v7x); at this toy
# size everything fits one VMEM block and a grid only adds overhead.

if __name__ == "__main__":
    key = jax.random.PRNGKey(0)
    k_in, k_params = jax.random.split(key)
    x = jax.random.normal(k_in, (2, 3, 16, 16), jnp.float32)  # NCHW like PyTorch
    model = DarknetPallas(CFG, k_params)
    det = model.forward(x, CUDA=False)
    det = jax.block_until_ready(det)
    assert det.shape == (2, 8 * 8 * 3 + 16 * 16 * 3, 7), det.shape
    assert bool(jnp.all(jnp.isfinite(det)))
    print("KERNEL_OK")
</pallas_src>

<mosaic_0001>
module attributes {stable_mosaic.version = 11 : i64} {
  func.func @conv_bn_leaky_kernel(%arg0: memref<8x27xf32, #tpu.memory_space<vmem>>, %arg1: memref<27x512xf32, #tpu.memory_space<vmem>>, %arg2: memref<8x1xf32, #tpu.memory_space<vmem>>, %arg3: memref<8x1xf32, #tpu.memory_space<vmem>>, %arg4: memref<8x512xf32, #tpu.memory_space<vmem>>) attributes {dimension_semantics = [], scalar_prefetch = 0 : i64, scratch_operands = 0 : i64, tpu.core_type = #tpu.core_type<tc>} {
    %c0 = arith.constant 0 : index
    %c0_0 = arith.constant 0 : index
    %0 = vector.load %arg0[%c0, %c0_0] : memref<8x27xf32, #tpu.memory_space<vmem>>, vector<8x27xf32>
    %c0_1 = arith.constant 0 : index
    %c0_2 = arith.constant 0 : index
    %1 = vector.load %arg1[%c0_1, %c0_2] : memref<27x512xf32, #tpu.memory_space<vmem>>, vector<27x512xf32>
    %cst = arith.constant dense<0.000000e+00> : vector<8x512xf32>
    %2 = tpu.matmul %0, %1, %cst {dimension_numbers = #tpu.dot_dimension_numbers<[1], [0], [0], [1], [0, 0, 1, 1], [], []>} : vector<8x27xf32>, vector<27x512xf32>, vector<8x512xf32> -> vector<8x512xf32>
    %cst_3 = arith.constant dense<0.000000e+00> : vector<8xf32>
    %3 = vector.multi_reduction <add>, %2, %cst_3 [1] : vector<8x512xf32> to vector<8xf32>
    %4 = vector.shape_cast %3 : vector<8xf32> to vector<8x1xf32>
    %cst_4 = arith.constant 5.120000e+02 : f32
    %5 = vector.broadcast %cst_4 : f32 to vector<8x1xf32>
    %6 = arith.divf %4, %5 : vector<8x1xf32>
    %7 = vector.broadcast %6 : vector<8x1xf32> to vector<8x512xf32>
    %8 = arith.subf %2, %7 : vector<8x512xf32>
    %9 = arith.mulf %8, %8 : vector<8x512xf32>
    %cst_5 = arith.constant dense<0.000000e+00> : vector<8xf32>
    %10 = vector.multi_reduction <add>, %9, %cst_5 [1] : vector<8x512xf32> to vector<8xf32>
    %11 = vector.shape_cast %10 : vector<8xf32> to vector<8x1xf32>
    %cst_6 = arith.constant 5.120000e+02 : f32
    %12 = vector.broadcast %cst_6 : f32 to vector<8x1xf32>
    %13 = arith.divf %11, %12 : vector<8x1xf32>
    %14 = vector.broadcast %6 : vector<8x1xf32> to vector<8x512xf32>
    %15 = arith.subf %2, %14 : vector<8x512xf32>
    %cst_7 = arith.constant 9.99999974E-6 : f32
    %16 = vector.broadcast %cst_7 : f32 to vector<8x1xf32>
    %17 = arith.addf %13, %16 : vector<8x1xf32>
    %18 = math.rsqrt %17 : vector<8x1xf32>
    %19 = vector.broadcast %18 : vector<8x1xf32> to vector<8x512xf32>
    %20 = arith.mulf %15, %19 : vector<8x512xf32>
    %c0_8 = arith.constant 0 : index
    %c0_9 = arith.constant 0 : index
    %21 = vector.load %arg2[%c0_8, %c0_9] : memref<8x1xf32, #tpu.memory_space<vmem>>, vector<8x1xf32>
    %22 = vector.broadcast %21 : vector<8x1xf32> to vector<8x512xf32>
    %23 = arith.mulf %20, %22 : vector<8x512xf32>
    %c0_10 = arith.constant 0 : index
    %c0_11 = arith.constant 0 : index
    %24 = vector.load %arg3[%c0_10, %c0_11] : memref<8x1xf32, #tpu.memory_space<vmem>>, vector<8x1xf32>
    %25 = vector.broadcast %24 : vector<8x1xf32> to vector<8x512xf32>
    %26 = arith.addf %23, %25 : vector<8x512xf32>
    %cst_12 = arith.constant 0.000000e+00 : f32
    %27 = vector.broadcast %cst_12 : f32 to vector<8x512xf32>
    %28 = arith.cmpf ogt, %26, %27 : vector<8x512xf32>
    %cst_13 = arith.constant 1.000000e-01 : f32
    %29 = vector.broadcast %cst_13 : f32 to vector<8x512xf32>
    %30 = arith.mulf %29, %26 : vector<8x512xf32>
    %31 = arith.select %28, %26, %30 : vector<8x512xi1>, vector<8x512xf32>
    %c0_14 = arith.constant 0 : index
    %c0_15 = arith.constant 0 : index
    %32 = vector.load %arg4[%c0_14, %c0_15] : memref<8x512xf32, #tpu.memory_space<vmem>>, vector<8x512xf32>
    tpu.vector_store %arg4[%c0_14, %c0_15], %31 {strides = array<i32>} : memref<8x512xf32, #tpu.memory_space<vmem>>, vector<8x512xf32>,
    return
  }
}

module attributes {stable_mosaic.version = 11 : i64} {
  func.func @conv_bn_leaky_kernel(%arg0: memref<16x72xf32, #tpu.memory_space<vmem>>, %arg1: memref<72x128xf32, #tpu.memory_space<vmem>>, %arg2: memref<16x1xf32, #tpu.memory_space<vmem>>, %arg3: memref<16x1xf32, #tpu.memory_space<vmem>>, %arg4: memref<16x128xf32, #tpu.memory_space<vmem>>) attributes {dimension_semantics = [], scalar_prefetch = 0 : i64, scratch_operands = 0 : i64, tpu.core_type = #tpu.core_type<tc>} {
    %c0 = arith.constant 0 : index
    %c0_0 = arith.constant 0 : index
    %0 = vector.load %arg0[%c0, %c0_0] : memref<16x72xf32, #tpu.memory_space<vmem>>, vector<16x72xf32>
    %c0_1 = arith.constant 0 : index
    %c0_2 = arith.constant 0 : index
    %1 = vector.load %arg1[%c0_1, %c0_2] : memref<72x128xf32, #tpu.memory_space<vmem>>, vector<72x128xf32>
    %cst = arith.constant dense<0.000000e+00> : vector<16x128xf32>
    %2 = tpu.matmul %0, %1, %cst {dimension_numbers = #tpu.dot_dimension_numbers<[1], [0], [0], [1], [0, 0, 1, 1], [], []>} : vector<16x72xf32>, vector<72x128xf32>, vector<16x128xf32> -> vector<16x128xf32>
    %cst_3 = arith.constant dense<0.000000e+00> : vector<16xf32>
    %3 = vector.multi_reduction <add>, %2, %cst_3 [1] : vector<16x128xf32> to vector<16xf32>
    %4 = vector.shape_cast %3 : vector<16xf32> to vector<16x1xf32>
    %cst_4 = arith.constant 1.280000e+02 : f32
    %5 = vector.broadcast %cst_4 : f32 to vector<16x1xf32>
    %6 = arith.divf %4, %5 : vector<16x1xf32>
    %7 = vector.broadcast %6 : vector<16x1xf32> to vector<16x128xf32>
    %8 = arith.subf %2, %7 : vector<16x128xf32>
    %9 = arith.mulf %8, %8 : vector<16x128xf32>
    %cst_5 = arith.constant dense<0.000000e+00> : vector<16xf32>
    %10 = vector.multi_reduction <add>, %9, %cst_5 [1] : vector<16x128xf32> to vector<16xf32>
    %11 = vector.shape_cast %10 : vector<16xf32> to vector<16x1xf32>
    %cst_6 = arith.constant 1.280000e+02 : f32
    %12 = vector.broadcast %cst_6 : f32 to vector<16x1xf32>
    %13 = arith.divf %11, %12 : vector<16x1xf32>
    %14 = vector.broadcast %6 : vector<16x1xf32> to vector<16x128xf32>
    %15 = arith.subf %2, %14 : vector<16x128xf32>
    %cst_7 = arith.constant 9.99999974E-6 : f32
    %16 = vector.broadcast %cst_7 : f32 to vector<16x1xf32>
    %17 = arith.addf %13, %16 : vector<16x1xf32>
    %18 = math.rsqrt %17 : vector<16x1xf32>
    %19 = vector.broadcast %18 : vector<16x1xf32> to vector<16x128xf32>
    %20 = arith.mulf %15, %19 : vector<16x128xf32>
    %c0_8 = arith.constant 0 : index
    %c0_9 = arith.constant 0 : index
    %21 = vector.load %arg2[%c0_8, %c0_9] : memref<16x1xf32, #tpu.memory_space<vmem>>, vector<16x1xf32>
    %22 = vector.broadcast %21 : vector<16x1xf32> to vector<16x128xf32>
    %23 = arith.mulf %20, %22 : vector<16x128xf32>
    %c0_10 = arith.constant 0 : index
    %c0_11 = arith.constant 0 : index
    %24 = vector.load %arg3[%c0_10, %c0_11] : memref<16x1xf32, #tpu.memory_space<vmem>>, vector<16x1xf32>
    %25 = vector.broadcast %24 : vector<16x1xf32> to vector<16x128xf32>
    %26 = arith.addf %23, %25 : vector<16x128xf32>
    %cst_12 = arith.constant 0.000000e+00 : f32
    %27 = vector.broadcast %cst_12 : f32 to vector<16x128xf32>
    %28 = arith.cmpf ogt, %26, %27 : vector<16x128xf32>
    %cst_13 = arith.constant 1.000000e-01 : f32
    %29 = vector.broadcast %cst_13 : f32 to vector<16x128xf32>
    %30 = arith.mulf %29, %26 : vector<16x128xf32>
    %31 = arith.select %28, %26, %30 : vector<16x128xi1>, vector<16x128xf32>
    %c0_14 = arith.constant 0 : index
    %c0_15 = arith.constant 0 : index
    %32 = vector.load %arg4[%c0_14, %c0_15] : memref<16x128xf32, #tpu.memory_space<vmem>>, vector<16x128xf32>
    tpu.vector_store %arg4[%c0_14, %c0_15], %31 {strides = array<i32>} : memref<16x128xf32, #tpu.memory_space<vmem>>, vector<16x128xf32>,
    return
  }
}

module attributes {stable_mosaic.version = 11 : i64} {
  func.func @conv_bn_leaky_kernel(%arg0: memref<8x16xf32, #tpu.memory_space<vmem>>, %arg1: memref<16x128xf32, #tpu.memory_space<vmem>>, %arg2: memref<8x1xf32, #tpu.memory_space<vmem>>, %arg3: memref<8x1xf32, #tpu.memory_space<vmem>>, %arg4: memref<8x128xf32, #tpu.memory_space<vmem>>) attributes {dimension_semantics = [], scalar_prefetch = 0 : i64, scratch_operands = 0 : i64, tpu.core_type = #tpu.core_type<tc>} {
    %c0 = arith.constant 0 : index
    %c0_0 = arith.constant 0 : index
    %0 = vector.load %arg0[%c0, %c0_0] : memref<8x16xf32, #tpu.memory_space<vmem>>, vector<8x16xf32>
    %c0_1 = arith.constant 0 : index
    %c0_2 = arith.constant 0 : index
    %1 = vector.load %arg1[%c0_1, %c0_2] : memref<16x128xf32, #tpu.memory_space<vmem>>, vector<16x128xf32>
    %cst = arith.constant dense<0.000000e+00> : vector<8x128xf32>
    %2 = tpu.matmul %0, %1, %cst {dimension_numbers = #tpu.dot_dimension_numbers<[1], [0], [0], [1], [0, 0, 1, 1], [], []>} : vector<8x16xf32>, vector<16x128xf32>, vector<8x128xf32> -> vector<8x128xf32>
    %cst_3 = arith.constant dense<0.000000e+00> : vector<8xf32>
    %3 = vector.multi_reduction <add>, %2, %cst_3 [1] : vector<8x128xf32> to vector<8xf32>
    %4 = vector.shape_cast %3 : vector<8xf32> to vector<8x1xf32>
    %cst_4 = arith.constant 1.280000e+02 : f32
    %5 = vector.broadcast %cst_4 : f32 to vector<8x1xf32>
    %6 = arith.divf %4, %5 : vector<8x1xf32>
    %7 = vector.broadcast %6 : vector<8x1xf32> to vector<8x128xf32>
    %8 = arith.subf %2, %7 : vector<8x128xf32>
    %9 = arith.mulf %8, %8 : vector<8x128xf32>
    %cst_5 = arith.constant dense<0.000000e+00> : vector<8xf32>
    %10 = vector.multi_reduction <add>, %9, %cst_5 [1] : vector<8x128xf32> to vector<8xf32>
    %11 = vector.shape_cast %10 : vector<8xf32> to vector<8x1xf32>
    %cst_6 = arith.constant 1.280000e+02 : f32
    %12 = vector.broadcast %cst_6 : f32 to vector<8x1xf32>
    %13 = arith.divf %11, %12 : vector<8x1xf32>
    %14 = vector.broadcast %6 : vector<8x1xf32> to vector<8x128xf32>
    %15 = arith.subf %2, %14 : vector<8x128xf32>
    %cst_7 = arith.constant 9.99999974E-6 : f32
    %16 = vector.broadcast %cst_7 : f32 to vector<8x1xf32>
    %17 = arith.addf %13, %16 : vector<8x1xf32>
    %18 = math.rsqrt %17 : vector<8x1xf32>
    %19 = vector.broadcast %18 : vector<8x1xf32> to vector<8x128xf32>
    %20 = arith.mulf %15, %19 : vector<8x128xf32>
    %c0_8 = arith.constant 0 : index
    %c0_9 = arith.constant 0 : index
    %21 = vector.load %arg2[%c0_8, %c0_9] : memref<8x1xf32, #tpu.memory_space<vmem>>, vector<8x1xf32>
    %22 = vector.broadcast %21 : vector<8x1xf32> to vector<8x128xf32>
    %23 = arith.mulf %20, %22 : vector<8x128xf32>
    %c0_10 = arith.constant 0 : index
    %c0_11 = arith.constant 0 : index
    %24 = vector.load %arg3[%c0_10, %c0_11] : memref<8x1xf32, #tpu.memory_space<vmem>>, vector<8x1xf32>
    %25 = vector.broadcast %24 : vector<8x1xf32> to vector<8x128xf32>
    %26 = arith.addf %23, %25 : vector<8x128xf32>
    %cst_12 = arith.constant 0.000000e+00 : f32
    %27 = vector.broadcast %cst_12 : f32 to vector<8x128xf32>
    %28 = arith.cmpf ogt, %26, %27 : vector<8x128xf32>
    %cst_13 = arith.constant 1.000000e-01 : f32
    %29 = vector.broadcast %cst_13 : f32 to vector<8x128xf32>
    %30 = arith.mulf %29, %26 : vector<8x128xf32>
    %31 = arith.select %28, %26, %30 : vector<8x128xi1>, vector<8x128xf32>
    %c0_14 = arith.constant 0 : index
    %c0_15 = arith.constant 0 : index
    %32 = vector.load %arg4[%c0_14, %c0_15] : memref<8x128xf32, #tpu.memory_space<vmem>>, vector<8x128xf32>
    tpu.vector_store %arg4[%c0_14, %c0_15], %31 {strides = array<i32>} : memref<8x128xf32, #tpu.memory_space<vmem>>, vector<8x128xf32>,
    return
  }
}

module attributes {stable_mosaic.version = 11 : i64} {
  func.func @add_kernel(%arg0: memref<16x128xf32, #tpu.memory_space<vmem>>, %arg1: memref<16x128xf32, #tpu.memory_space<vmem>>, %arg2: memref<16x128xf32, #tpu.memory_space<vmem>>) attributes {dimension_semantics = [], scalar_prefetch = 0 : i64, scratch_operands = 0 : i64, tpu.core_type = #tpu.core_type<tc>} {
    %c0 = arith.constant 0 : index
    %c0_0 = arith.constant 0 : index
    %0 = vector.load %arg0[%c0, %c0_0] : memref<16x128xf32, #tpu.memory_space<vmem>>, vector<16x128xf32>
    %c0_1 = arith.constant 0 : index
    %c0_2 = arith.constant 0 : index
    %1 = vector.load %arg1[%c0_1, %c0_2] : memref<16x128xf32, #tpu.memory_space<vmem>>, vector<16x128xf32>
    %2 = arith.addf %0, %1 : vector<16x128xf32>
    %c0_3 = arith.constant 0 : index
    %c0_4 = arith.constant 0 : index
    %3 = vector.load %arg2[%c0_3, %c0_4] : memref<16x128xf32, #tpu.memory_space<vmem>>, vector<16x128xf32>
    tpu.vector_store %arg2[%c0_3, %c0_4], %2 {strides = array<i32>} : memref<16x128xf32, #tpu.memory_space<vmem>>, vector<16x128xf32>,
    return
  }
}

module attributes {stable_mosaic.version = 11 : i64} {
  func.func @conv_bn_leaky_kernel(%arg0: memref<16x144xf32, #tpu.memory_space<vmem>>, %arg1: memref<144x512xf32, #tpu.memory_space<vmem>>, %arg2: memref<16x1xf32, #tpu.memory_space<vmem>>, %arg3: memref<16x1xf32, #tpu.memory_space<vmem>>, %arg4: memref<16x512xf32, #tpu.memory_space<vmem>>) attributes {dimension_semantics = [], scalar_prefetch = 0 : i64, scratch_operands = 0 : i64, tpu.core_type = #tpu.core_type<tc>} {
    %c0 = arith.constant 0 : index
    %c0_0 = arith.constant 0 : index
    %0 = vector.load %arg0[%c0, %c0_0] : memref<16x144xf32, #tpu.memory_space<vmem>>, vector<16x144xf32>
    %c0_1 = arith.constant 0 : index
    %c0_2 = arith.constant 0 : index
    %1 = vector.load %arg1[%c0_1, %c0_2] : memref<144x512xf32, #tpu.memory_space<vmem>>, vector<144x512xf32>
    %cst = arith.constant dense<0.000000e+00> : vector<16x512xf32>
    %2 = tpu.matmul %0, %1, %cst {dimension_numbers = #tpu.dot_dimension_numbers<[1], [0], [0], [1], [0, 0, 1, 1], [], []>} : vector<16x144xf32>, vector<144x512xf32>, vector<16x512xf32> -> vector<16x512xf32>
    %cst_3 = arith.constant dense<0.000000e+00> : vector<16xf32>
    %3 = vector.multi_reduction <add>, %2, %cst_3 [1] : vector<16x512xf32> to vector<16xf32>
    %4 = vector.shape_cast %3 : vector<16xf32> to vector<16x1xf32>
    %cst_4 = arith.constant 5.120000e+02 : f32
    %5 = vector.broadcast %cst_4 : f32 to vector<16x1xf32>
    %6 = arith.divf %4, %5 : vector<16x1xf32>
    %7 = vector.broadcast %6 : vector<16x1xf32> to vector<16x512xf32>
    %8 = arith.subf %2, %7 : vector<16x512xf32>
    %9 = arith.mulf %8, %8 : vector<16x512xf32>
    %cst_5 = arith.constant dense<0.000000e+00> : vector<16xf32>
    %10 = vector.multi_reduction <add>, %9, %cst_5 [1] : vector<16x512xf32> to vector<16xf32>
    %11 = vector.shape_cast %10 : vector<16xf32> to vector<16x1xf32>
    %cst_6 = arith.constant 5.120000e+02 : f32
    %12 = vector.broadcast %cst_6 : f32 to vector<16x1xf32>
    %13 = arith.divf %11, %12 : vector<16x1xf32>
    %14 = vector.broadcast %6 : vector<16x1xf32> to vector<16x512xf32>
    %15 = arith.subf %2, %14 : vector<16x512xf32>
    %cst_7 = arith.constant 9.99999974E-6 : f32
    %16 = vector.broadcast %cst_7 : f32 to vector<16x1xf32>
    %17 = arith.addf %13, %16 : vector<16x1xf32>
    %18 = math.rsqrt %17 : vector<16x1xf32>
    %19 = vector.broadcast %18 : vector<16x1xf32> to vector<16x512xf32>
    %20 = arith.mulf %15, %19 : vector<16x512xf32>
    %c0_8 = arith.constant 0 : index
    %c0_9 = arith.constant 0 : index
    %21 = vector.load %arg2[%c0_8, %c0_9] : memref<16x1xf32, #tpu.memory_space<vmem>>, vector<16x1xf32>
    %22 = vector.broadcast %21 : vector<16x1xf32> to vector<16x512xf32>
    %23 = arith.mulf %20, %22 : vector<16x512xf32>
    %c0_10 = arith.constant 0 : index
    %c0_11 = arith.constant 0 : index
    %24 = vector.load %arg3[%c0_10, %c0_11] : memref<16x1xf32, #tpu.memory_space<vmem>>, vector<16x1xf32>
    %25 = vector.broadcast %24 : vector<16x1xf32> to vector<16x512xf32>
    %26 = arith.addf %23, %25 : vector<16x512xf32>
    %cst_12 = arith.constant 0.000000e+00 : f32
    %27 = vector.broadcast %cst_12 : f32 to vector<16x512xf32>
    %28 = arith.cmpf ogt, %26, %27 : vector<16x512xf32>
    %cst_13 = arith.constant 1.000000e-01 : f32
    %29 = vector.broadcast %cst_13 : f32 to vector<16x512xf32>
    %30 = arith.mulf %29, %26 : vector<16x512xf32>
    %31 = arith.select %28, %26, %30 : vector<16x512xi1>, vector<16x512xf32>
    %c0_14 = arith.constant 0 : index
    %c0_15 = arith.constant 0 : index
    %32 = vector.load %arg4[%c0_14, %c0_15] : memref<16x512xf32, #tpu.memory_space<vmem>>, vector<16x512xf32>
    tpu.vector_store %arg4[%c0_14, %c0_15], %31 {strides = array<i32>} : memref<16x512xf32, #tpu.memory_space<vmem>>, vector<16x512xf32>,
    return
  }
}

module attributes {stable_mosaic.version = 11 : i64} {
  func.func @conv_bias_kernel(%arg0: memref<21x16xf32, #tpu.memory_space<vmem>>, %arg1: memref<16x512xf32, #tpu.memory_space<vmem>>, %arg2: memref<21x1xf32, #tpu.memory_space<vmem>>, %arg3: memref<21x512xf32, #tpu.memory_space<vmem>>) attributes {dimension_semantics = [], scalar_prefetch = 0 : i64, scratch_operands = 0 : i64, tpu.core_type = #tpu.core_type<tc>} {
    %c0 = arith.constant 0 : index
    %c0_0 = arith.constant 0 : index
    %0 = vector.load %arg0[%c0, %c0_0] : memref<21x16xf32, #tpu.memory_space<vmem>>, vector<21x16xf32>
    %c0_1 = arith.constant 0 : index
    %c0_2 = arith.constant 0 : index
    %1 = vector.load %arg1[%c0_1, %c0_2] : memref<16x512xf32, #tpu.memory_space<vmem>>, vector<16x512xf32>
    %cst = arith.constant dense<0.000000e+00> : vector<21x512xf32>
    %2 = tpu.matmul %0, %1, %cst {dimension_numbers = #tpu.dot_dimension_numbers<[1], [0], [0], [1], [0, 0, 1, 1], [], []>} : vector<21x16xf32>, vector<16x512xf32>, vector<21x512xf32> -> vector<21x512xf32>
    %c0_3 = arith.constant 0 : index
    %c0_4 = arith.constant 0 : index
    %3 = vector.load %arg2[%c0_3, %c0_4] : memref<21x1xf32, #tpu.memory_space<vmem>>, vector<21x1xf32>
    %4 = vector.broadcast %3 : vector<21x1xf32> to vector<21x512xf32>
    %5 = arith.addf %2, %4 : vector<21x512xf32>
    %c0_5 = arith.constant 0 : index
    %c0_6 = arith.constant 0 : index
    %6 = vector.load %arg3[%c0_5, %c0_6] : memref<21x512xf32, #tpu.memory_space<vmem>>, vector<21x512xf32>
    tpu.vector_store %arg3[%c0_5, %c0_6], %5 {strides = array<i32>} : memref<21x512xf32, #tpu.memory_space<vmem>>, vector<21x512xf32>,
    return
  }
}

module attributes {stable_mosaic.version = 11 : i64} {
  func.func @yolo_kernel(%arg0: memref<2x7x768xf32, #tpu.memory_space<vmem>>, %arg1: memref<1x7x768xf32, #tpu.memory_space<vmem>>, %arg2: memref<1x7x768xf32, #tpu.memory_space<vmem>>, %arg3: memref<2x7x768xf32, #tpu.memory_space<vmem>>) attributes {dimension_semantics = [], scalar_prefetch = 0 : i64, scratch_operands = 0 : i64, tpu.core_type = #tpu.core_type<tc>} {
    %c0 = arith.constant 0 : index
    %c0_0 = arith.constant 0 : index
    %c0_1 = arith.constant 0 : index
    %0 = vector.load %arg0[%c0, %c0_0, %c0_1] : memref<2x7x768xf32, #tpu.memory_space<vmem>>, vector<2x7x768xf32>
    %1 = tpu.iota {dimensions = array<i32: 1>} : vector<2x7x768xi32>
    %c2_i32 = arith.constant 2 : i32
    %2 = vector.broadcast %c2_i32 : i32 to vector<2x7x768xi32>
    %3 = arith.cmpi slt, %1, %2 : vector<2x7x768xi32>
    %c2_i32_2 = arith.constant 2 : i32
    %4 = vector.broadcast %c2_i32_2 : i32 to vector<2x7x768xi32>
    %5 = arith.cmpi sge, %1, %4 : vector<2x7x768xi32>
    %c4_i32 = arith.constant 4 : i32
    %6 = vector.broadcast %c4_i32 : i32 to vector<2x7x768xi32>
    %7 = arith.cmpi slt, %1, %6 : vector<2x7x768xi32>
    %8 = arith.andi %5, %7 : vector<2x7x768xi1>
    %9 = arith.negf %0 : vector<2x7x768xf32>
    %10 = math.exp %9 : vector<2x7x768xf32>
    %cst = arith.constant 1.000000e+00 : f32
    %11 = vector.broadcast %cst : f32 to vector<2x7x768xf32>
    %12 = arith.addf %11, %10 : vector<2x7x768xf32>
    %13 = arith.divf %11, %12 : vector<2x7x768xf32>
    %cst_3 = arith.constant 0.000000e+00 : f32
    %14 = vector.broadcast %cst_3 : f32 to vector<2x7x768xf32>
    %15 = arith.select %8, %0, %14 : vector<2x7x768xi1>, vector<2x7x768xf32>
    %16 = math.exp %15 : vector<2x7x768xf32>
    %c0_4 = arith.constant 0 : index
    %c0_5 = arith.constant 0 : index
    %c0_6 = arith.constant 0 : index
    %17 = vector.load %arg1[%c0_4, %c0_5, %c0_6] : memref<1x7x768xf32, #tpu.memory_space<vmem>>, vector<1x7x768xf32>
    %18 = vector.broadcast %17 : vector<1x7x768xf32> to vector<2x7x768xf32>
    %19 = arith.addf %13, %18 : vector<2x7x768xf32>
    %cst_7 = arith.constant 1.000000e+00 : f32
    %20 = vector.broadcast %cst_7 : f32 to vector<2x7x768xf32>
    %21 = arith.mulf %19, %20 : vector<2x7x768xf32>
    %c0_8 = arith.constant 0 : index
    %c0_9 = arith.constant 0 : index
    %c0_10 = arith.constant 0 : index
    %22 = vector.load %arg2[%c0_8, %c0_9, %c0_10] : memref<1x7x768xf32, #tpu.memory_space<vmem>>, vector<1x7x768xf32>
    %23 = vector.broadcast %22 : vector<1x7x768xf32> to vector<2x7x768xf32>
    %24 = arith.mulf %16, %23 : vector<2x7x768xf32>
    %25 = arith.select %8, %24, %13 : vector<2x7x768xi1>, vector<2x7x768xf32>
    %26 = arith.select %3, %21, %25 : vector<2x7x768xi1>, vector<2x7x768xf32>
    %c0_11 = arith.constant 0 : index
    %c0_12 = arith.constant 0 : index
    %c0_13 = arith.constant 0 : index
    %27 = vector.load %arg3[%c0_11, %c0_12, %c0_13] : memref<2x7x768xf32, #tpu.memory_space<vmem>>, vector<2x7x768xf32>
    tpu.vector_store %arg3[%c0_11, %c0_12, %c0_13], %26 {strides = array<i32>} : memref<2x7x768xf32, #tpu.memory_space<vmem>>, vector<2x7x768xf32>,
    return
  }
}

module attributes {stable_mosaic.version = 11 : i64} {
  func.func @conv_bias_kernel(%arg0: memref<21x16xf32, #tpu.memory_space<vmem>>, %arg1: memref<16x128xf32, #tpu.memory_space<vmem>>, %arg2: memref<21x1xf32, #tpu.memory_space<vmem>>, %arg3: memref<21x128xf32, #tpu.memory_space<vmem>>) attributes {dimension_semantics = [], scalar_prefetch = 0 : i64, scratch_operands = 0 : i64, tpu.core_type = #tpu.core_type<tc>} {
    %c0 = arith.constant 0 : index
    %c0_0 = arith.constant 0 : index
    %0 = vector.load %arg0[%c0, %c0_0] : memref<21x16xf32, #tpu.memory_space<vmem>>, vector<21x16xf32>
    %c0_1 = arith.constant 0 : index
    %c0_2 = arith.constant 0 : index
    %1 = vector.load %arg1[%c0_1, %c0_2] : memref<16x128xf32, #tpu.memory_space<vmem>>, vector<16x128xf32>
    %cst = arith.constant dense<0.000000e+00> : vector<21x128xf32>
    %2 = tpu.matmul %0, %1, %cst {dimension_numbers = #tpu.dot_dimension_numbers<[1], [0], [0], [1], [0, 0, 1, 1], [], []>} : vector<21x16xf32>, vector<16x128xf32>, vector<21x128xf32> -> vector<21x128xf32>
    %c0_3 = arith.constant 0 : index
    %c0_4 = arith.constant 0 : index
    %3 = vector.load %arg2[%c0_3, %c0_4] : memref<21x1xf32, #tpu.memory_space<vmem>>, vector<21x1xf32>
    %4 = vector.broadcast %3 : vector<21x1xf32> to vector<21x128xf32>
    %5 = arith.addf %2, %4 : vector<21x128xf32>
    %c0_5 = arith.constant 0 : index
    %c0_6 = arith.constant 0 : index
    %6 = vector.load %arg3[%c0_5, %c0_6] : memref<21x128xf32, #tpu.memory_space<vmem>>, vector<21x128xf32>
    tpu.vector_store %arg3[%c0_5, %c0_6], %5 {strides = array<i32>} : memref<21x128xf32, #tpu.memory_space<vmem>>, vector<21x128xf32>,
    return
  }
}

module attributes {stable_mosaic.version = 11 : i64} {
  func.func @yolo_kernel(%arg0: memref<2x7x192xf32, #tpu.memory_space<vmem>>, %arg1: memref<1x7x192xf32, #tpu.memory_space<vmem>>, %arg2: memref<1x7x192xf32, #tpu.memory_space<vmem>>, %arg3: memref<2x7x192xf32, #tpu.memory_space<vmem>>) attributes {dimension_semantics = [], scalar_prefetch = 0 : i64, scratch_operands = 0 : i64, tpu.core_type = #tpu.core_type<tc>} {
    %c0 = arith.constant 0 : index
    %c0_0 = arith.constant 0 : index
    %c0_1 = arith.constant 0 : index
    %0 = vector.load %arg0[%c0, %c0_0, %c0_1] : memref<2x7x192xf32, #tpu.memory_space<vmem>>, vector<2x7x192xf32>
    %1 = tpu.iota {dimensions = array<i32: 1>} : vector<2x7x192xi32>
    %c2_i32 = arith.constant 2 : i32
    %2 = vector.broadcast %c2_i32 : i32 to vector<2x7x192xi32>
    %3 = arith.cmpi slt, %1, %2 : vector<2x7x192xi32>
    %c2_i32_2 = arith.constant 2 : i32
    %4 = vector.broadcast %c2_i32_2 : i32 to vector<2x7x192xi32>
    %5 = arith.cmpi sge, %1, %4 : vector<2x7x192xi32>
    %c4_i32 = arith.constant 4 : i32
    %6 = vector.broadcast %c4_i32 : i32 to vector<2x7x192xi32>
    %7 = arith.cmpi slt, %1, %6 : vector<2x7x192xi32>
    %8 = arith.andi %5, %7 : vector<2x7x192xi1>
    %9 = arith.negf %0 : vector<2x7x192xf32>
    %10 = math.exp %9 : vector<2x7x192xf32>
    %cst = arith.constant 1.000000e+00 : f32
    %11 = vector.broadcast %cst : f32 to vector<2x7x192xf32>
    %12 = arith.addf %11, %10 : vector<2x7x192xf32>
    %13 = arith.divf %11, %12 : vector<2x7x192xf32>
    %cst_3 = arith.constant 0.000000e+00 : f32
    %14 = vector.broadcast %cst_3 : f32 to vector<2x7x192xf32>
    %15 = arith.select %8, %0, %14 : vector<2x7x192xi1>, vector<2x7x192xf32>
    %16 = math.exp %15 : vector<2x7x192xf32>
    %c0_4 = arith.constant 0 : index
    %c0_5 = arith.constant 0 : index
    %c0_6 = arith.constant 0 : index
    %17 = vector.load %arg1[%c0_4, %c0_5, %c0_6] : memref<1x7x192xf32, #tpu.memory_space<vmem>>, vector<1x7x192xf32>
    %18 = vector.broadcast %17 : vector<1x7x192xf32> to vector<2x7x192xf32>
    %19 = arith.addf %13, %18 : vector<2x7x192xf32>
    %cst_7 = arith.constant 2.000000e+00 : f32
    %20 = vector.broadcast %cst_7 : f32 to vector<2x7x192xf32>
    %21 = arith.mulf %19, %20 : vector<2x7x192xf32>
    %c0_8 = arith.constant 0 : index
    %c0_9 = arith.constant 0 : index
    %c0_10 = arith.constant 0 : index
    %22 = vector.load %arg2[%c0_8, %c0_9, %c0_10] : memref<1x7x192xf32, #tpu.memory_space<vmem>>, vector<1x7x192xf32>
    %23 = vector.broadcast %22 : vector<1x7x192xf32> to vector<2x7x192xf32>
    %24 = arith.mulf %16, %23 : vector<2x7x192xf32>
    %25 = arith.select %8, %24, %13 : vector<2x7x192xi1>, vector<2x7x192xf32>
    %26 = arith.select %3, %21, %25 : vector<2x7x192xi1>, vector<2x7x192xf32>
    %c0_11 = arith.constant 0 : index
    %c0_12 = arith.constant 0 : index
    %c0_13 = arith.constant 0 : index
    %27 = vector.load %arg3[%c0_11, %c0_12, %c0_13] : memref<2x7x192xf32, #tpu.memory_space<vmem>>, vector<2x7x192xf32>
    tpu.vector_store %arg3[%c0_11, %c0_12, %c0_13], %26 {strides = array<i32>} : memref<2x7x192xf32, #tpu.memory_space<vmem>>, vector<2x7x192xf32>,
    return
  }
}

</mosaic_0001>

<bundles_post_ra>
// kernel: _forward.11
= control target key start
LH: loop header
LB: loop body
LE: loop exit
PB: predicated region body
PF: predicated region fallthrough
CT: control target
= control target key end

     0   :  { %9 = vsyncpa [#allocation3], 0  ;;  %s271_s18 = smov [#allocation2]   ;;  %s368_s0 = inlined_call_operand.hbm [shape: f32[8,27], index: 0, kind: input, shape index: {}]   ;;  %s369_s1 = inlined_call_operand.vmem [shape: f32[27,512], index: 1, kind: input, shape index: {}]   ;;  %s370_s2 = inlined_call_operand.vmem [shape: f32[8,1], index: 2, kind: input, shape index: {}]   ;;  %s371_s3 = inlined_call_operand.vmem [shape: f32[8,1], index: 3, kind: input, shape index: {}]   ;;  %s372_s4 = inlined_call_operand.vmem [shape: f32[8,512], index: 4, kind: output, shape index: {}]  }
   0x1   :  { %s15_s17 = sshll.u32 %s368_s0, 4  ;;  %s17_s19 = sshll.u32 %s271_s18, 4  ;;  %s16_s17 = int_to_ptr.hbm [resolvable:$true] %s15_s17  ;;  %s18_s19 = int_to_ptr.vmem [resolvable:$true] %s17_s19 }
   0x2   :  { %20 = dma.hbm_to_vmem [thread:$0]  %s16_s17, 128, %s18_s19, [#allocation3]  }
   0x3   :  { %269 = dma.done.wait [#allocation3], 128  }
   0x4   :  { %270 = vsyncadd [#allocation3], 4294967168  ;;  %vm52_vm0 = vcmask 1042432   ;;  %v46_v0 = vld [vmem:[%s369_s1 + $0x70] sm:$0x7]  ;;  %v43_v6 = vld [vmem:[%s369_s1 + $0x58] sm:$0xff] }
   0x5   :  { %v42_v1 = vld [vmem:[%s369_s1 + $0x50] sm:$0xff]  ;;  %v47_v2 = vld [vmem:[%s369_s1 + $0x78] sm:$0x7]  ;;  %232 = vmatpush.msk.msra.mxu2 %vm52_vm0, %v46_v0  ;;  %v44_v3 = vld [vmem:[%s369_s1 + $0x60] sm:$0x7]  ;;  %vm48_vm1 = vcmask 220160  }
   0x6   :  { %234 = vmatpush.msk.msra.mxu3 %vm52_vm0, %v47_v2  ;;  %v45_v4 = vld [vmem:[%s369_s1 + $0x68] sm:$0x7]  ;;  %v38_v5 = vld [vmem:[%s369_s1 + $0x30] sm:$0xff]  ;;  %228 = vmatpush.msk.msra.mxu0 %vm52_vm0, %v44_v3  ;;  %v40_v7 = vld [vmem:[%s369_s1 + $0x40] sm:$0xff]  ;;  %v272_v24 = vmov 512.0   ;;  %v273_v28 = vmov 0  }
   0x7   :  { %230 = vmatpush.msk.msra.mxu1 %vm52_vm0, %v45_v4  ;;  %v41_v8 = vld [vmem:[%s369_s1 + $0x48] sm:$0xff]  ;;  %118 = vmatpush.msra.mxu2 %v42_v1  ;;  %v34_v9 = vld [vmem:[%s369_s1 + $0x10] sm:$0xff]  ;;  %v39_v10 = vld [vmem:[%s369_s1 + $0x38] sm:$0xff]  ;;  %241 = vrcp.f32 %v272_v24 }
   0x8   :  { %138 = vmatpush.msra.mxu3 %v43_v6  ;;  %78 = vmatpush.msra.mxu0 %v40_v7  ;;  %v36_v11 = vld [vmem:[%s369_s1 + $0x20] sm:$0xff]  ;;  %v37_v12 = vld [vmem:[%s369_s1 + $0x28] sm:$0xff]  ;;  %v35_v13 = vld [vmem:[%s369_s1 + $0x18] sm:$0xff] }
   0x9   :  { %98 = vmatpush.msra.mxu1 %v41_v8  ;;  %119 = vmatpush.msra.mxu2 %v38_v5  ;;  %v31_v14 = vld [vmem:[#allocation2] sm:$0xff]  ;;  %v33_v16 = vld [vmem:[%s369_s1 + $0x8] sm:$0xff] }
   0xa   :  { %139 = vmatpush.msra.mxu3 %v39_v10  ;;  %79 = vmatpush.msra.mxu0 %v36_v11  ;;  %v32_v15 = vld [vmem:[%s369_s1] sm:$0xff] }
   0xb   :  { %99 = vmatpush.msra.mxu1 %v37_v12  ;;  %120 = vmatpush.msra.mxu2 %v34_v9  ;;  %v187_v26 = vld [vmem:[%s370_s2] sm:$0xff] }
   0xc   :  { %140 = vmatpush.msra.mxu3 %v35_v13  ;;  %233 = vmatmul.msk.f32.vlgmr.msra.gmra.mxu2 %vm48_vm1, %v31_v14  ;;  %v197_v30 = vld [vmem:[%s371_s3] sm:$0xff] }
   0xd   :  { %235 = vmatmul.msk.f32.vlgmr.msra.gmra.mxu3 %vm48_vm1, %v31_v14  ;;  %80 = vmatpush.msra.mxu0 %v32_v15  ;;  %v242_v25 = vpop.eup %241 }
   0xe   :  { %100 = vmatpush.msra.mxu1 %v33_v16  ;;  %229 = vmatmul.msk.f32.vlgmr.msra.gmra.mxu0 %vm48_vm1, %v31_v14  ;;  %v151_v27 = vmul.f32 512.0, %v242_v25  ;;  %vm155_vm2 = vweird.f32 %v242_v25 }
   0xf   :  { %231 = vmatmul.msk.f32.vlgmr.msra.gmra.mxu1 %vm48_vm1, %v31_v14  ;;  %239 = vset.pattern.permute.xlu1 %v273_v28 }
  0x10   :  { %240 = vset.pattern.permute.xlu0 %v273_v28  ;;  %190 = vperm.xlu1 %239, %v187_v26   ;;  %v152_v29 = vsub.f32 1.0, %v151_v27 }
  0x12   :  { %v153_v31 = vmul.f32 %v242_v25, %v152_v29 }
  0x14   :  { %v154_v32 = vadd.f32 %v242_v25, %v153_v31 }
  0x16   :  { %v156_v33 = vsel %vm155_vm2, %v242_v25, %v154_v32 }
  0x18   :  { %200 = vperm.xlu1 %239, %v197_v30  }
  0x82   :  { %v191_v54 = vpop.permute.xlu1 %190 }
  0x8a   :  { %v201_v2 = vpop.permute.xlu1 %200 }
  0x8b   :  { %v82_v17 = vpop.f32.mrf.mxu0 }
  0x8c   :  { %v102_v18 = vpop.f32.mrf.mxu1 }
  0x8d   :  { %v145_v19 = vadd.f32 %v102_v18, %v82_v17 }
  0x8f   :  { %v122_v20 = vpop.f32.mrf.mxu2 }
  0x90   :  { %v142_v21 = vpop.f32.mrf.mxu3  ;;  %v146_v22 = vadd.f32 %v145_v19, %v122_v20 }
  0x92   :  { %v147_v23 = vadd.f32 %v146_v22, %v142_v21 }
  0x94   :  { %148 = vadd.xlane.f32.xlu0 %v147_v23 }
 0x107   :  { %v149_v34 = vpop.xlane.xlu0 %148 }
 0x108   :  { %v157_v35 = vmul.f32 %v156_v33, %v149_v34 }
 0x10a   :  { %v158_v36 = vsub.f32 %v82_v17, %v157_v35  ;;  %v159_v37 = vsub.f32 %v102_v18, %v157_v35  ;;  %v160_v38 = vsub.f32 %v122_v20, %v157_v35  ;;  %v161_v39 = vsub.f32 %v142_v21, %v157_v35 }
 0x10c   :  { %v162_v40 = vmul.f32 %v158_v36, %v158_v36  ;;  %v163_v41 = vmul.f32 %v159_v37, %v159_v37  ;;  %v164_v42 = vmul.f32 %v160_v38, %v160_v38  ;;  %v165_v44 = vmul.f32 %v161_v39, %v161_v39 }
 0x10e   :  { %v166_v43 = vadd.f32 %v163_v41, %v162_v40 }
 0x110   :  { %v167_v45 = vadd.f32 %v166_v43, %v164_v42 }
 0x112   :  { %v168_v46 = vadd.f32 %v167_v45, %v165_v44 }
 0x114   :  { %169 = vadd.xlane.f32.xlu0 %v168_v46 }
 0x187   :  { %v170_v47 = vpop.xlane.xlu0 %169 }
 0x188   :  { %v171_v48 = vmul.f32 %v170_v47, %v156_v33 }
 0x18a   :  { %v172_v49 = vadd.f32 1e-05, %v171_v48 }
 0x18c   :  { %243 = vrsqrt.f32 %v172_v49  ;;  %vm179_vm4 = vweird.f32 %v172_v49 }
 0x192   :  { %v244_v50 = vpop.eup %243 }
 0x193   :  { %v174_v51 = vmul.f32 %v244_v50, %v172_v49  ;;  %vm180_vm3 = vweird.f32 %v244_v50 }
 0x194   :  { %vm181_vm5 = vmor %vm179_vm4, %vm180_vm3 }
 0x195   :  { %v175_v52 = vmul.f32 %v244_v50, %v174_v51 }
 0x197   :  { %v176_v53 = vmul.f32 0.5, %v175_v52 }
 0x199   :  { %v177_v55 = vsub.f32 1.5, %v176_v53 }
 0x19b   :  { %v178_v56 = vmul.f32 %v244_v50, %v177_v55 }
 0x19d   :  { %v182_v57 = vsel %vm181_vm5, %v244_v50, %v178_v56 }
 0x19e   :  { %v183_v58 = vmul.f32 %v182_v57, %v158_v36  ;;  %v184_v59 = vmul.f32 %v182_v57, %v159_v37  ;;  %v185_v60 = vmul.f32 %v182_v57, %v160_v38  ;;  %v186_v61 = vmul.f32 %v182_v57, %v161_v39 }
 0x1a0   :  { %v193_v62 = vmul.f32 %v191_v54, %v183_v58  ;;  %v194_v63 = vmul.f32 %v191_v54, %v184_v59  ;;  %v195_v0 = vmul.f32 %v191_v54, %v185_v60  ;;  %v196_v1 = vmul.f32 %v191_v54, %v186_v61 }
 0x1a2   :  { %v203_v3 = vadd.f32 %v201_v2, %v193_v62  ;;  %v204_v4 = vadd.f32 %v201_v2, %v194_v63  ;;  %v205_v5 = vadd.f32 %v201_v2, %v195_v0  ;;  %v206_v6 = vadd.f32 %v201_v2, %v196_v1 }
 0x1a4   :  { %vm207_vm6 = vcmp.gt.f32.partialorder %v203_v3, 0.0  ;;  %vm208_vm7 = vcmp.gt.f32.partialorder %v204_v4, 0.0  ;;  %vm209_vm8 = vcmp.gt.f32.partialorder %v205_v5, 0.0  ;;  %vm210_vm9 = vcmp.gt.f32.partialorder %v206_v6, 0.0 }
 0x1a5   :  { %v211_v7 = vmul.f32 0.1, %v203_v3  ;;  %v212_v8 = vmul.f32 0.1, %v204_v4  ;;  %v213_v9 = vmul.f32 0.1, %v205_v5 }
 0x1a6   :  { %v214_v10 = vmul.f32 0.1, %v206_v6 }
 0x1a7   :  { %v215_v11 = vsel %vm207_vm6, %v203_v3, %v211_v7  ;;  %v216_v12 = vsel %vm208_vm7, %v204_v4, %v212_v8  ;;  %v217_v13 = vsel %vm209_vm8, %v205_v5, %v213_v9 }
 0x1a8   :  { %v218_v14 = vsel %vm210_vm9, %v206_v6, %v214_v10  ;;  %219 = vst [vmem:[%s372_s4] sm:$0xff] %v215_v11 }
 0x1a9   :  { %220 = vst [vmem:[%s372_s4 + $0x8] sm:$0xff] %v216_v12 }
 0x1aa   :  { %221 = vst [vmem:[%s372_s4 + $0x10] sm:$0xff] %v217_v13 }
 0x1ab   :  { %222 = vst [vmem:[%s372_s4 + $0x18] sm:$0xff] %v218_v14 }
 0x1ac   :  { %227 = vsyncpa [#allocation3], 1 }

// kernel: _forward.12
= control target key start
LH: loop header
LB: loop body
LE: loop exit
PB: predicated region body
PF: predicated region fallthrough
CT: control target
= control target key end

     0   :  { %vm28_vm0 = vcmask 588800   ;;  %v167_v13 = vmov 128.0   ;;  %v168_v17 = vmov 0   ;;  %s245_s1 = inlined_call_operand.vmem [shape: f32[72,128], index: 1, kind: input, shape index: {}]   ;;  %s246_s0 = inlined_call_operand.vmem [shape: f32[16,72], index: 0, kind: input, shape index: {}]   ;;  %s247_s3 = inlined_call_operand.vmem [shape: f32[16,1], index: 3, kind: input, shape index: {}]   ;;  %s248_s2 = inlined_call_operand.vmem [shape: f32[16,1], index: 2, kind: input, shape index: {}]   ;;  %s249_s4 = inlined_call_operand.vmem [shape: f32[16,128], index: 4, kind: output, shape index: {}]  }
   0x1   :  { %v27_v0 = vld [vmem:[%s245_s1 + $0x40] sm:$0xff]  ;;  %v26_v1 = vld [vmem:[%s245_s1 + $0x38] sm:$0xff]  ;;  %v25_v2 = vld [vmem:[%s245_s1 + $0x30] sm:$0xff]  ;;  %161 = vrcp.f32 %v167_v13  ;;  %159 = vset.pattern.permute.xlu0 %v168_v17  ;;  %160 = vset.pattern.permute.xlu1 %v168_v17 }
   0x2   :  { %42 = vmatpush.msra.mxu0 %v27_v0  ;;  %147 = vmatpush.msra.mxu1 %v27_v0  ;;  %v24_v3 = vld [vmem:[%s245_s1 + $0x28] sm:$0xff]  ;;  %v23_v4 = vld [vmem:[%s245_s1 + $0x20] sm:$0xff]  ;;  %v22_v5 = vld [vmem:[%s245_s1 + $0x18] sm:$0xff] }
   0x3   :  { %v21_v6 = vld [vmem:[%s245_s1 + $0x10] sm:$0xff]  ;;  %v20_v7 = vld [vmem:[%s245_s1 + $0x8] sm:$0xff]  ;;  %v19_v8 = vld [vmem:[%s245_s1] sm:$0xff]  ;;  %158 = vset.pattern.permute.xlu2 %v168_v17 }
   0x4   :  { %43 = vmatpush.msra.mxu0 %v26_v1  ;;  %148 = vmatpush.msra.mxu1 %v26_v1  ;;  %v17_v9 = vld [vmem:[%s246_s0] sm:$0xff]  ;;  %v18_v10 = vld [vmem:[%s246_s0 + $0x8] sm:$0xff] }
   0x5   :  { %v119_v16 = vld [vmem:[%s247_s3] sm:$0xff]  ;;  %v106_v31 = vld [vmem:[%s248_s2 + $0x8] sm:$0xff] }
   0x6   :  { %44 = vmatpush.msra.mxu0 %v25_v2  ;;  %149 = vmatpush.msra.mxu1 %v25_v2  ;;  %v105_v27 = vld [vmem:[%s248_s2] sm:$0xff]  ;;  %v120_v32 = vld [vmem:[%s247_s3 + $0x8] sm:$0xff] }
   0x7   :  { %v162_v14 = vpop.eup %161  ;;  %109 = vperm.xlu2 %158, %v105_v27  }
   0x8   :  { %45 = vmatpush.msra.mxu0 %v24_v3  ;;  %150 = vmatpush.msra.mxu1 %v24_v3  ;;  %v63_v15 = vmul.f32 128.0, %v162_v14  ;;  %vm67_vm1 = vweird.f32 %v162_v14 }
   0xa   :  { %46 = vmatpush.msra.mxu0 %v23_v4  ;;  %151 = vmatpush.msra.mxu1 %v23_v4  ;;  %v64_v18 = vsub.f32 1.0, %v63_v15 }
   0xc   :  { %47 = vmatpush.msra.mxu0 %v22_v5  ;;  %152 = vmatpush.msra.mxu1 %v22_v5  ;;  %v65_v19 = vmul.f32 %v162_v14, %v64_v18 }
   0xe   :  { %48 = vmatpush.msra.mxu0 %v21_v6  ;;  %153 = vmatpush.msra.mxu1 %v21_v6  ;;  %v66_v20 = vadd.f32 %v162_v14, %v65_v19 }
   0xf   :  { %114 = vperm.xlu2 %158, %v106_v31  }
  0x10   :  { %49 = vmatpush.msra.mxu0 %v20_v7  ;;  %154 = vmatpush.msra.mxu1 %v20_v7  ;;  %v68_v21 = vsel %vm67_vm1, %v162_v14, %v66_v20 }
  0x12   :  { %50 = vmatpush.msra.mxu0 %v19_v8  ;;  %155 = vmatpush.msra.mxu1 %v19_v8 }
  0x13   :  { %145 = vmatmul.msk.f32.vlgmr.msra.gmra.mxu0 %vm28_vm0, %v17_v9  ;;  %146 = vmatmul.msk.f32.vlgmr.msra.gmra.mxu1 %vm28_vm0, %v18_v10 }
  0x61   :  { %v110_v48 = vpop.permute.xlu2 %109 }
  0x69   :  { %v115_v61 = vpop.permute.xlu2 %114 }
  0x90   :  { %v52_v11 = vpop.f32.mrf.mxu0  ;;  %v55_v12 = vpop.f32.mrf.mxu1 }
  0x91   :  { %58 = vadd.xlane.f32.xlu0 %v52_v11 }
  0x99   :  { %60 = vadd.xlane.f32.xlu0 %v55_v12 }
  0xad   :  { %123 = vperm.xlu0 %159, %v119_v16  }
 0x104   :  { %v59_v22 = vpop.xlane.xlu0 %58 }
 0x105   :  { %v69_v23 = vmul.f32 %v68_v21, %v59_v22 }
 0x107   :  { %v71_v24 = vsub.f32 %v52_v11, %v69_v23 }
 0x109   :  { %v73_v25 = vmul.f32 %v71_v24, %v71_v24 }
 0x10b   :  { %75 = vadd.xlane.f32.xlu1 %v73_v25 }
 0x10c   :  { %v61_v26 = vpop.xlane.xlu0 %60 }
 0x10d   :  { %v70_v28 = vmul.f32 %v68_v21, %v61_v26 }
 0x10f   :  { %v72_v29 = vsub.f32 %v55_v12, %v70_v28 }
 0x111   :  { %v74_v30 = vmul.f32 %v72_v29, %v72_v29 }
 0x113   :  { %77 = vadd.xlane.f32.xlu1 %v74_v30 }
 0x11f   :  { %v124_v52 = vpop.permute.xlu0 %123 }
 0x12c   :  { %128 = vperm.xlu1 %160, %v120_v32  }
 0x17e   :  { %v76_v33 = vpop.xlane.xlu1 %75 }
 0x17f   :  { %v79_v34 = vmul.f32 %v76_v33, %v68_v21 }
 0x181   :  { %v81_v35 = vadd.f32 1e-05, %v79_v34 }
 0x183   :  { %163 = vrsqrt.f32 %v81_v35  ;;  %vm89_vm3 = vweird.f32 %v81_v35 }
 0x186   :  { %v78_v36 = vpop.xlane.xlu1 %77 }
 0x187   :  { %v80_v37 = vmul.f32 %v78_v36, %v68_v21 }
 0x189   :  { %v164_v38 = vpop.eup %163  ;;  %v82_v39 = vadd.f32 1e-05, %v80_v37 }
 0x18a   :  { %v84_v40 = vmul.f32 %v164_v38, %v81_v35  ;;  %vm90_vm2 = vweird.f32 %v164_v38 }
 0x18b   :  { %165 = vrsqrt.f32 %v82_v39  ;;  %vm91_vm4 = vmor %vm89_vm3, %vm90_vm2  ;;  %vm99_vm6 = vweird.f32 %v82_v39 }
 0x18c   :  { %v85_v41 = vmul.f32 %v164_v38, %v84_v40 }
 0x18e   :  { %v86_v42 = vmul.f32 0.5, %v85_v41 }
 0x190   :  { %v87_v43 = vsub.f32 1.5, %v86_v42 }
 0x191   :  { %v166_v44 = vpop.eup %165 }
 0x192   :  { %v94_v45 = vmul.f32 %v166_v44, %v82_v39  ;;  %v88_v46 = vmul.f32 %v164_v38, %v87_v43  ;;  %vm100_vm5 = vweird.f32 %v166_v44 }
 0x193   :  { %vm101_vm7 = vmor %vm99_vm6, %vm100_vm5 }
 0x194   :  { %v95_v47 = vmul.f32 %v166_v44, %v94_v45  ;;  %v92_v49 = vsel %vm91_vm4, %v164_v38, %v88_v46 }
 0x195   :  { %v103_v50 = vmul.f32 %v92_v49, %v71_v24 }
 0x196   :  { %v96_v51 = vmul.f32 0.5, %v95_v47 }
 0x197   :  { %v117_v53 = vmul.f32 %v110_v48, %v103_v50 }
 0x198   :  { %v97_v54 = vsub.f32 1.5, %v96_v51 }
 0x199   :  { %v131_v55 = vadd.f32 %v124_v52, %v117_v53 }
 0x19a   :  { %v98_v56 = vmul.f32 %v166_v44, %v97_v54 }
 0x19b   :  { %vm133_vm8 = vcmp.gt.f32.partialorder %v131_v55, 0.0  ;;  %v135_v57 = vmul.f32 0.1, %v131_v55 }
 0x19c   :  { %v102_v58 = vsel %vm101_vm7, %v166_v44, %v98_v56 }
 0x19d   :  { %v104_v59 = vmul.f32 %v102_v58, %v72_v29  ;;  %v137_v60 = vsel %vm133_vm8, %v131_v55, %v135_v57 }
 0x19e   :  { %139 = vst [vmem:[%s249_s4] sm:$0xff] %v137_v60  ;;  %v129_v62 = vpop.permute.xlu1 %128 }
 0x19f   :  { %v118_v63 = vmul.f32 %v115_v61, %v104_v59 }
 0x1a1   :  { %v132_v0 = vadd.f32 %v129_v62, %v118_v63 }
 0x1a3   :  { %vm134_vm9 = vcmp.gt.f32.partialorder %v132_v0, 0.0  ;;  %v136_v1 = vmul.f32 0.1, %v132_v0 }
 0x1a5   :  { %v138_v2 = vsel %vm134_vm9, %v132_v0, %v136_v1 }
 0x1a6   :  { %140 = vst [vmem:[%s249_s4 + $0x8] sm:$0xff] %v138_v2 }

// kernel: _forward.13
= control target key start
LH: loop header
LB: loop body
LE: loop exit
PB: predicated region body
PF: predicated region fallthrough
CT: control target
= control target key end

     0   :  { %vm20_vm0 = vcmask 130048   ;;  %v102_v4 = vmov 128.0   ;;  %v103_v6 = vmov 0   ;;  %s147_s1 = inlined_call_operand.vmem [shape: f32[16,128], index: 1, kind: input, shape index: {}]   ;;  %s148_s0 = inlined_call_operand.vmem [shape: f32[8,16], index: 0, kind: input, shape index: {}]   ;;  %s149_s2 = inlined_call_operand.vmem [shape: f32[8,1], index: 2, kind: input, shape index: {}]   ;;  %s150_s3 = inlined_call_operand.vmem [shape: f32[8,1], index: 3, kind: input, shape index: {}]   ;;  %s151_s4 = inlined_call_operand.vmem [shape: f32[8,128], index: 4, kind: output, shape index: {}]  }
   0x1   :  { %v19_v0 = vld [vmem:[%s147_s1 + $0x8] sm:$0xff]  ;;  %v18_v1 = vld [vmem:[%s147_s1] sm:$0xff]  ;;  %98 = vrcp.f32 %v102_v4  ;;  %96 = vset.pattern.permute.xlu1 %v103_v6  ;;  %97 = vset.pattern.permute.xlu0 %v103_v6 }
   0x2   :  { %38 = vmatpush.msra.mxu0 %v19_v0  ;;  %v17_v2 = vld [vmem:[%s148_s0] sm:$0xff] }
   0x3   :  { %v71_v5 = vld [vmem:[%s149_s2] sm:$0xff] }
   0x4   :  { %39 = vmatpush.msra.mxu0 %v18_v1  ;;  %74 = vperm.xlu1 %96, %v71_v5   ;;  %v78_v9 = vld [vmem:[%s150_s3] sm:$0xff] }
   0x5   :  { %93 = vmatmul.msk.f32.vlgmr.msra.gmra.mxu0 %vm20_vm0, %v17_v2 }
   0x7   :  { %v99_v7 = vpop.eup %98 }
   0x8   :  { %v47_v8 = vmul.f32 128.0, %v99_v7  ;;  %vm51_vm1 = vweird.f32 %v99_v7 }
   0xa   :  { %v48_v10 = vsub.f32 1.0, %v47_v8 }
   0xc   :  { %81 = vperm.xlu1 %96, %v78_v9   ;;  %v49_v11 = vmul.f32 %v99_v7, %v48_v10 }
   0xe   :  { %v50_v12 = vadd.f32 %v99_v7, %v49_v11 }
  0x10   :  { %v52_v13 = vsel %vm51_vm1, %v99_v7, %v50_v12 }
  0x76   :  { %v75_v25 = vpop.permute.xlu1 %74 }
  0x7e   :  { %v82_v31 = vpop.permute.xlu1 %81 }
  0x82   :  { %v41_v3 = vpop.f32.mrf.mxu0 }
  0x83   :  { %44 = vadd.xlane.f32.xlu0 %v41_v3 }
  0xf6   :  { %v45_v14 = vpop.xlane.xlu0 %44 }
  0xf7   :  { %v53_v15 = vmul.f32 %v52_v13, %v45_v14 }
  0xf9   :  { %v54_v16 = vsub.f32 %v41_v3, %v53_v15 }
  0xfb   :  { %v55_v17 = vmul.f32 %v54_v16, %v54_v16 }
  0xfd   :  { %56 = vadd.xlane.f32.xlu0 %v55_v17 }
 0x170   :  { %v57_v18 = vpop.xlane.xlu0 %56 }
 0x171   :  { %v58_v19 = vmul.f32 %v57_v18, %v52_v13 }
 0x173   :  { %v59_v20 = vadd.f32 1e-05, %v58_v19 }
 0x175   :  { %100 = vrsqrt.f32 %v59_v20  ;;  %vm66_vm3 = vweird.f32 %v59_v20 }
 0x17b   :  { %v101_v21 = vpop.eup %100 }
 0x17c   :  { %v61_v22 = vmul.f32 %v101_v21, %v59_v20  ;;  %vm67_vm2 = vweird.f32 %v101_v21 }
 0x17d   :  { %vm68_vm4 = vmor %vm66_vm3, %vm67_vm2 }
 0x17e   :  { %v62_v23 = vmul.f32 %v101_v21, %v61_v22 }
 0x180   :  { %v63_v24 = vmul.f32 0.5, %v62_v23 }
 0x182   :  { %v64_v26 = vsub.f32 1.5, %v63_v24 }
 0x184   :  { %v65_v27 = vmul.f32 %v101_v21, %v64_v26 }
 0x186   :  { %v69_v28 = vsel %vm68_vm4, %v101_v21, %v65_v27 }
 0x187   :  { %v70_v29 = vmul.f32 %v69_v28, %v54_v16 }
 0x189   :  { %v77_v30 = vmul.f32 %v75_v25, %v70_v29 }
 0x18b   :  { %v84_v32 = vadd.f32 %v82_v31, %v77_v30 }
 0x18d   :  { %vm85_vm5 = vcmp.gt.f32.partialorder %v84_v32, 0.0  ;;  %v86_v33 = vmul.f32 0.1, %v84_v32 }
 0x18f   :  { %v87_v34 = vsel %vm85_vm5, %v84_v32, %v86_v33 }
 0x190   :  { %88 = vst [vmem:[%s151_s4] sm:$0xff] %v87_v34 }

// kernel: _forward.15
= control target key start
LH: loop header
LB: loop body
LE: loop exit
PB: predicated region body
PF: predicated region fallthrough
CT: control target
= control target key end

     0   :  { %s56_s0 = inlined_call_operand.vmem [shape: f32[16,128], index: 0, kind: input, shape index: {}]   ;;  %s57_s1 = inlined_call_operand.vmem [shape: f32[16,128], index: 1, kind: input, shape index: {}]   ;;  %s58_s2 = inlined_call_operand.vmem [shape: f32[16,128], index: 2, kind: output, shape index: {}]  }
   0x1   :  { %v11_v0 = vld [vmem:[%s56_s0] sm:$0xff]  ;;  %v12_v2 = vld [vmem:[%s56_s0 + $0x8] sm:$0xff] }
   0x2   :  { %v13_v1 = vld [vmem:[%s57_s1] sm:$0xff]  ;;  %v14_v4 = vld [vmem:[%s57_s1 + $0x8] sm:$0xff] }
   0x3   :  { %v15_v3 = vadd.f32 %v13_v1, %v11_v0  ;;  %v16_v5 = vadd.f32 %v14_v4, %v12_v2 }
   0x5   :  { %17 = vst [vmem:[%s58_s2] sm:$0xff] %v15_v3 }
   0x6   :  { %18 = vst [vmem:[%s58_s2 + $0x8] sm:$0xff] %v16_v5 }

// kernel: _forward.19
= control target key start
LH: loop header
LB: loop body
LE: loop exit
PB: predicated region body
PF: predicated region fallthrough
CT: control target
= control target key end

     0   :  { %vm93_vm0 = vcmask 130048   ;;  %s789_s1 = inlined_call_operand.vmem [shape: f32[144,512], index: 1, kind: input, shape index: {}]   ;;  %s790_s0 = inlined_call_operand.vmem [shape: f32[16,144], index: 0, kind: input, shape index: {}]   ;;  %s791_s2 = inlined_call_operand.vmem [shape: f32[16,1], index: 2, kind: input, shape index: {}]   ;;  %s792_s3 = inlined_call_operand.vmem [shape: f32[16,1], index: 3, kind: input, shape index: {}]   ;;  %s793_s4 = inlined_call_operand.vmem [shape: f32[16,512], index: 4, kind: output, shape index: {}]  }
   0x1   :  { %v82_v0 = vld [vmem:[%s789_s1 + $0x1e8] sm:$0xff]  ;;  %v89_v2 = vld [vmem:[%s789_s1 + $0x220] sm:$0xff]  ;;  %v91_v7 = vld [vmem:[%s789_s1 + $0x230] sm:$0xff] }
   0x2   :  { %v493_v1 = vld [vmem:[%s789_s1 + $0x228] sm:$0xff]  ;;  %146 = vmatpush.msra.mxu2 %v82_v0  ;;  %v81_v3 = vld [vmem:[%s789_s1 + $0x1e0] sm:$0xff]  ;;  %137 = vmatpush.msra.mxu1 %v89_v2  ;;  %v83_v10 = vld [vmem:[%s789_s1 + $0x1f0] sm:$0xff] }
   0x3   :  { %445 = vmatpush.msra.mxu3 %v493_v1  ;;  %v78_v4 = vld [vmem:[%s789_s1 + $0x1c8] sm:$0xff]  ;;  %100 = vmatpush.msra.mxu0 %v81_v3  ;;  %v85_v6 = vld [vmem:[%s789_s1 + $0x200] sm:$0xff]  ;;  %v87_v11 = vld [vmem:[%s789_s1 + $0x210] sm:$0xff] }
   0x4   :  { %v508_v5 = vld [vmem:[%s789_s1 + $0x208] sm:$0xff]  ;;  %v77_v8 = vld [vmem:[%s789_s1 + $0x1c0] sm:$0xff]  ;;  %147 = vmatpush.msra.mxu2 %v78_v4  ;;  %138 = vmatpush.msra.mxu1 %v85_v6  ;;  %v538_v14 = vld [vmem:[%s790_s0 + $0x18] sm:$0xff] }
   0x5   :  { %446 = vmatpush.msra.mxu3 %v508_v5  ;;  %v74_v9 = vld [vmem:[%s789_s1 + $0x1a8] sm:$0xff]  ;;  %v73_v12 = vld [vmem:[%s789_s1 + $0x1a0] sm:$0xff]  ;;  %101 = vmatpush.msra.mxu0 %v77_v8  ;;  %v79_v15 = vld [vmem:[%s789_s1 + $0x1d0] sm:$0xff] }
   0x6   :  { %v70_v13 = vld [vmem:[%s789_s1 + $0x188] sm:$0xff]  ;;  %148 = vmatpush.msra.mxu2 %v74_v9  ;;  %192 = vmatpush.msrb.mxu1 %v83_v10  ;;  %v84_v16 = vld [vmem:[%s789_s1 + $0x1f8] sm:$0xff]  ;;  %v69_v17 = vld [vmem:[%s789_s1 + $0x180] sm:$0xff] }
   0x7   :  { %229 = vmatpush.msrb.mxu3 %v91_v7  ;;  %102 = vmatpush.msra.mxu0 %v73_v12  ;;  %v66_v18 = vld [vmem:[%s789_s1 + $0x168] sm:$0xff]  ;;  %v75_v19 = vld [vmem:[%s789_s1 + $0x1b0] sm:$0xff]  ;;  %v80_v20 = vld [vmem:[%s789_s1 + $0x1d8] sm:$0xff] }
   0x8   :  { %149 = vmatpush.msra.mxu2 %v70_v13  ;;  %440 = vmatmul.msk.f32.vlgmr.msra.gmra.mxu3 %vm93_vm0, %v538_v14  ;;  %v65_v21 = vld [vmem:[%s789_s1 + $0x160] sm:$0xff]  ;;  %v62_v22 = vld [vmem:[%s789_s1 + $0x148] sm:$0xff]  ;;  %v71_v23 = vld [vmem:[%s789_s1 + $0x190] sm:$0xff] }
   0x9   :  { %230 = vmatpush.msrb.mxu3 %v87_v11  ;;  %193 = vmatpush.msrb.mxu1 %v79_v15  ;;  %v76_v24 = vld [vmem:[%s789_s1 + $0x1b8] sm:$0xff]  ;;  %v61_v25 = vld [vmem:[%s789_s1 + $0x140] sm:$0xff]  ;;  %v58_v26 = vld [vmem:[%s789_s1 + $0x128] sm:$0xff] }
   0xa   :  { %103 = vmatpush.msra.mxu0 %v69_v17  ;;  %150 = vmatpush.msra.mxu2 %v66_v18  ;;  %v67_v27 = vld [vmem:[%s789_s1 + $0x170] sm:$0xff]  ;;  %v72_v28 = vld [vmem:[%s789_s1 + $0x198] sm:$0xff]  ;;  %v57_v29 = vld [vmem:[%s789_s1 + $0x120] sm:$0xff] }
   0xb   :  { %238 = vmatpush.msra.mxu3 %v84_v16  ;;  %194 = vmatpush.msrb.mxu1 %v75_v19  ;;  %v54_v30 = vld [vmem:[%s789_s1 + $0x108] sm:$0xff]  ;;  %v63_v31 = vld [vmem:[%s789_s1 + $0x150] sm:$0xff]  ;;  %v68_v32 = vld [vmem:[%s789_s1 + $0x178] sm:$0xff] }
   0xc   :  { %104 = vmatpush.msra.mxu0 %v65_v21  ;;  %151 = vmatpush.msra.mxu2 %v62_v22  ;;  %v53_v33 = vld [vmem:[%s789_s1 + $0x100] sm:$0xff]  ;;  %v50_v34 = vld [vmem:[%s789_s1 + $0xe8] sm:$0xff]  ;;  %v59_v35 = vld [vmem:[%s789_s1 + $0x130] sm:$0xff] }
   0xd   :  { %239 = vmatpush.msra.mxu3 %v80_v20  ;;  %195 = vmatpush.msrb.mxu1 %v71_v23  ;;  %v64_v36 = vld [vmem:[%s789_s1 + $0x158] sm:$0xff]  ;;  %v49_v37 = vld [vmem:[%s789_s1 + $0xe0] sm:$0xff]  ;;  %v46_v38 = vld [vmem:[%s789_s1 + $0xc8] sm:$0xff] }
   0xe   :  { %105 = vmatpush.msra.mxu0 %v61_v25  ;;  %152 = vmatpush.msra.mxu2 %v58_v26  ;;  %v55_v39 = vld [vmem:[%s789_s1 + $0x110] sm:$0xff]  ;;  %v60_v40 = vld [vmem:[%s789_s1 + $0x138] sm:$0xff]  ;;  %v623_v41 = vld [vmem:[%s790_s0 + $0x8] sm:$0xff] }
   0xf   :  { %240 = vmatpush.msra.mxu3 %v76_v24  ;;  %196 = vmatpush.msrb.mxu1 %v67_v27  ;;  %v45_v42 = vld [vmem:[%s789_s1 + $0xc0] sm:$0xff]  ;;  %v42_v43 = vld [vmem:[%s789_s1 + $0xa8] sm:$0xff]  ;;  %v51_v44 = vld [vmem:[%s789_s1 + $0xf0] sm:$0xff] }
  0x10   :  { %106 = vmatpush.msra.mxu0 %v57_v29  ;;  %153 = vmatpush.msra.mxu2 %v54_v30  ;;  %v56_v45 = vld [vmem:[%s789_s1 + $0x118] sm:$0xff]  ;;  %v41_v46 = vld [vmem:[%s789_s1 + $0xa0] sm:$0xff]  ;;  %v38_v47 = vld [vmem:[%s789_s1 + $0x88] sm:$0xff] }
  0x11   :  { %241 = vmatpush.msra.mxu3 %v72_v28  ;;  %197 = vmatpush.msrb.mxu1 %v63_v31  ;;  %v47_v48 = vld [vmem:[%s789_s1 + $0xd0] sm:$0xff]  ;;  %v52_v49 = vld [vmem:[%s789_s1 + $0xf8] sm:$0xff]  ;;  %v37_v50 = vld [vmem:[%s789_s1 + $0x80] sm:$0xff] }
  0x12   :  { %107 = vmatpush.msra.mxu0 %v53_v33  ;;  %154 = vmatpush.msra.mxu2 %v50_v34  ;;  %v34_v51 = vld [vmem:[%s789_s1 + $0x68] sm:$0xff]  ;;  %v43_v52 = vld [vmem:[%s789_s1 + $0xb0] sm:$0xff]  ;;  %v48_v53 = vld [vmem:[%s789_s1 + $0xd8] sm:$0xff] }
  0x13   :  { %242 = vmatpush.msra.mxu3 %v68_v32  ;;  %198 = vmatpush.msrb.mxu1 %v59_v35  ;;  %v33_v54 = vld [vmem:[%s789_s1 + $0x60] sm:$0xff]  ;;  %v30_v55 = vld [vmem:[%s789_s1 + $0x48] sm:$0xff]  ;;  %v39_v56 = vld [vmem:[%s789_s1 + $0x90] sm:$0xff] }
  0x14   :  { %108 = vmatpush.msra.mxu0 %v49_v37  ;;  %155 = vmatpush.msra.mxu2 %v46_v38  ;;  %v44_v57 = vld [vmem:[%s789_s1 + $0xb8] sm:$0xff]  ;;  %v29_v58 = vld [vmem:[%s789_s1 + $0x40] sm:$0xff]  ;;  %v26_v59 = vld [vmem:[%s789_s1 + $0x28] sm:$0xff] }
  0x15   :  { %243 = vmatpush.msra.mxu3 %v64_v36  ;;  %199 = vmatpush.msrb.mxu1 %v55_v39  ;;  %v35_v60 = vld [vmem:[%s789_s1 + $0x70] sm:$0xff]  ;;  %v40_v61 = vld [vmem:[%s789_s1 + $0x98] sm:$0xff]  ;;  %v25_v62 = vld [vmem:[%s789_s1 + $0x20] sm:$0xff] }
  0x16   :  { %437 = vmatmul.msk.f32.vlgmr.msra.gmra.mxu1 %vm93_vm0, %v623_v41  ;;  %109 = vmatpush.msra.mxu0 %v45_v42  ;;  %v22_v63 = vld [vmem:[%s789_s1 + $0x8] sm:$0xff]  ;;  %v31_v0 = vld [vmem:[%s789_s1 + $0x50] sm:$0xff]  ;;  %v36_v2 = vld [vmem:[%s789_s1 + $0x78] sm:$0xff]  ;;  %v460_v42 = vmov 512.0  }
  0x17   :  { %244 = vmatpush.msra.mxu3 %v60_v40  ;;  %156 = vmatpush.msra.mxu2 %v42_v43  ;;  %v17_v3 = vld [vmem:[%s790_s0] sm:$0xff]  ;;  %v27_v6 = vld [vmem:[%s789_s1 + $0x30] sm:$0xff]  ;;  %v32_v7 = vld [vmem:[%s789_s1 + $0x58] sm:$0xff]  ;;  %454 = vrcp.f32 %v460_v42 }
  0x18   :  { %200 = vmatpush.msrb.mxu1 %v51_v44  ;;  %441 = vmatmul.msk.f32.vlgmr.msrb.gmra.mxu3 %vm93_vm0, %v623_v41  ;;  %v21_v4 = vld [vmem:[%s789_s1] sm:$0xff]  ;;  %v23_v8 = vld [vmem:[%s789_s1 + $0x10] sm:$0xff]  ;;  %v28_v9 = vld [vmem:[%s789_s1 + $0x38] sm:$0xff] }
  0x19   :  { %245 = vmatpush.msra.mxu3 %v56_v45  ;;  %110 = vmatpush.msra.mxu0 %v41_v46  ;;  %v24_v10 = vld [vmem:[%s789_s1 + $0x18] sm:$0xff]  ;;  %v19_v11 = vld [vmem:[%s790_s0 + $0x10] sm:$0xff] }
  0x1a   :  { %157 = vmatpush.msra.mxu2 %v38_v47  ;;  %201 = vmatpush.msrb.mxu1 %v47_v48  ;;  %v88_v12 = vld [vmem:[%s789_s1 + $0x218] sm:$0xff]  ;;  %v461_v47 = vmov 0  }
  0x1b   :  { %246 = vmatpush.msra.mxu3 %v52_v49  ;;  %111 = vmatpush.msra.mxu0 %v37_v50 }
  0x1c   :  { %158 = vmatpush.msra.mxu2 %v34_v51  ;;  %202 = vmatpush.msrb.mxu1 %v43_v52 }
  0x1d   :  { %247 = vmatpush.msra.mxu3 %v48_v53  ;;  %112 = vmatpush.msra.mxu0 %v33_v54  ;;  %v455_v43 = vpop.eup %454 }
  0x1e   :  { %159 = vmatpush.msra.mxu2 %v30_v55  ;;  %203 = vmatpush.msrb.mxu1 %v39_v56  ;;  %v295_v44 = vmul.f32 512.0, %v455_v43  ;;  %vm299_vm1 = vweird.f32 %v455_v43 }
  0x1f   :  { %248 = vmatpush.msra.mxu3 %v44_v57  ;;  %438 = vmatmul.msk.f32.gmra.mxu1 %vm93_vm0, %v538_v14 }
  0x20   :  { %113 = vmatpush.msra.mxu0 %v29_v58  ;;  %160 = vmatpush.msra.mxu2 %v26_v59  ;;  %v296_v45 = vsub.f32 1.0, %v295_v44 }
  0x21   :  { %204 = vmatpush.msrb.mxu1 %v35_v60  ;;  %249 = vmatpush.msra.mxu3 %v40_v61 }
  0x22   :  { %442 = vmatmul.msk.f32.gmra.mxu3 %vm93_vm0, %v538_v14  ;;  %114 = vmatpush.msra.mxu0 %v25_v62  ;;  %v297_v46 = vmul.f32 %v455_v43, %v296_v45 }
  0x23   :  { %161 = vmatpush.msra.mxu2 %v22_v63  ;;  %205 = vmatpush.msrb.mxu1 %v31_v0 }
  0x24   :  { %250 = vmatpush.msra.mxu3 %v36_v2  ;;  %162 = vmatmul.f32.vlgmr.msra.gmra.mxu2 %v17_v3  ;;  %v298_v48 = vadd.f32 %v455_v43, %v297_v46 }
  0x25   :  { %183 = vmatpush.msrb.mxu2 %v493_v1  ;;  %115 = vmatpush.msra.mxu0 %v21_v4  ;;  %v92_v1 = vld [vmem:[%s789_s1 + $0x238] sm:$0xff] }
  0x26   :  { %206 = vmatpush.msrb.mxu1 %v27_v6  ;;  %251 = vmatpush.msra.mxu3 %v32_v7  ;;  %v300_v50 = vsel %vm299_vm1, %v455_v43, %v298_v48 }
  0x27   :  { %116 = vmatmul.f32.vlgmr.msra.gmra.mxu0 %v17_v3  ;;  %184 = vmatpush.msrb.mxu2 %v508_v5 }
  0x28   :  { %207 = vmatpush.msrb.mxu1 %v23_v8  ;;  %252 = vmatpush.msra.mxu3 %v28_v9 }
  0x29   :  { %208 = vmatmul.f32.vlgmr.msrb.gmra.mxu1 %v17_v3  ;;  %275 = vmatpush.msrb.mxu0 %v92_v1 }
  0x2a   :  { %253 = vmatpush.msra.mxu3 %v24_v10  ;;  %447 = vmatpush.msra.mxu1 %v92_v1  ;;  %v381_v1 = vld [vmem:[%s792_s3] sm:$0xff] }
  0x2b   :  { %254 = vmatmul.f32.vlgmr.msra.gmra.mxu3 %v17_v3  ;;  %276 = vmatpush.msrb.mxu0 %v88_v12 }
  0x2c   :  { %165 = vmatmul.f32.gmra.mxu2 %v19_v11  ;;  %448 = vmatpush.msra.mxu1 %v88_v12 }
  0x2d   :  { %453 = vset.pattern.permute.xlu1 %v461_v47  ;;  %452 = vset.pattern.permute.xlu0 %v461_v47 }
  0x2e   :  { %451 = vset.pattern.permute.xlu2 %v461_v47 }
  0x2f   :  { %119 = vmatmul.f32.gmra.mxu0 %v19_v11 }
  0x31   :  { %211 = vmatmul.f32.gmra.mxu1 %v19_v11 }
  0x33   :  { %257 = vmatmul.f32.gmra.mxu3 %v19_v11  ;;  %v361_v11 = vld [vmem:[%s791_s2] sm:$0xff] }
  0x34   :  { %439 = vmatmul.msk.f32.vlgmr.msrb.gmra.mxu2 %vm93_vm0, %v623_v41  ;;  %365 = vperm.xlu2 %451, %v361_v11  }
  0x37   :  { %443 = vmatmul.msk.f32.vlgmr.msrb.gmra.mxu0 %vm93_vm0, %v623_v41 }
  0x39   :  { %444 = vmatmul.msk.f32.vlgmr.msra.gmra.mxu1 %vm93_vm0, %v538_v14 }
  0x8b   :  { %v189_v13 = vpop.f32.mrf.mxu3 }
  0x93   :  { %v140_v5 = vpop.f32.mrf.mxu1 }
  0x9b   :  { %v232_v16 = vpop.f32.mrf.mxu3 }
  0x9c   :  { %v143_v15 = vpop.f32.mrf.mxu1 }
  0xa4   :  { %v117_v17 = vpop.f32.mrf.mxu0 }
  0xa5   :  { %v235_v20 = vpop.f32.mrf.mxu3  ;;  %v141_v27 = vadd.f32 %v140_v5, %v117_v17 }
  0xa6   :  { %v209_v19 = vpop.f32.mrf.mxu1 }
  0xa7   :  { %v163_v18 = vpop.f32.mrf.mxu2  ;;  %v233_v29 = vadd.f32 %v232_v16, %v209_v19  ;;  %v382_v16 = vld [vmem:[%s792_s3 + $0x8] sm:$0xff] }
  0xac   :  { %v120_v21 = vpop.f32.mrf.mxu0 }
  0xad   :  { %v144_v33 = vadd.f32 %v143_v15, %v120_v21  ;;  %v362_v15 = vld [vmem:[%s791_s2 + $0x8] sm:$0xff] }
  0xae   :  { %v212_v23 = vpop.f32.mrf.mxu1  ;;  %v255_v24 = vpop.f32.mrf.mxu3  ;;  %370 = vperm.xlu2 %451, %v362_v15  }
  0xaf   :  { %v166_v22 = vpop.f32.mrf.mxu2  ;;  %v236_v37 = vadd.f32 %v235_v20, %v212_v23 }
  0xb0   :  { %v190_v14 = vadd.f32 %v189_v13, %v166_v22 }
  0xb2   :  { %v289_v38 = vadd.f32 %v190_v14, %v144_v33 }
  0xb4   :  { %v278_v26 = vpop.f32.mrf.mxu0  ;;  %v290_v40 = vadd.f32 %v289_v38, %v236_v37 }
  0xb5   :  { %v279_v31 = vadd.f32 %v278_v26, %v255_v24 }
  0xb6   :  { %v258_v35 = vpop.f32.mrf.mxu3  ;;  %v281_v36 = vpop.f32.mrf.mxu1 }
  0xb7   :  { %v186_v25 = vpop.f32.mrf.mxu2  ;;  %v282_v39 = vadd.f32 %v281_v36, %v258_v35 }
  0xb8   :  { %v187_v28 = vadd.f32 %v186_v25, %v163_v18 }
  0xb9   :  { %v291_v41 = vadd.f32 %v290_v40, %v282_v39 }
  0xba   :  { %v284_v30 = vadd.f32 %v187_v28, %v141_v27 }
  0xbc   :  { %v285_v32 = vadd.f32 %v284_v30, %v233_v29 }
  0xbe   :  { %v286_v34 = vadd.f32 %v285_v32, %v279_v31 }
  0xc0   :  { %287 = vadd.xlane.f32.xlu0 %v286_v34 }
  0xc8   :  { %292 = vadd.xlane.f32.xlu0 %v291_v41 }
  0xdc   :  { %385 = vperm.xlu0 %452, %v381_v1  }
 0x133   :  { %v288_v49 = vpop.xlane.xlu0 %287 }
 0x134   :  { %v301_v51 = vmul.f32 %v300_v50, %v288_v49 }
 0x136   :  { %v743_v54 = vsub.f32 %v141_v27, %v301_v51  ;;  %v745_v55 = vsub.f32 %v187_v28, %v301_v51  ;;  %v305_v6 = vsub.f32 %v233_v29, %v301_v51  ;;  %v306_v9 = vsub.f32 %v279_v31, %v301_v51  ;;  %v366_v27 = vpop.permute.xlu2 %365 }
 0x138   :  { %v311_v0 = vmul.f32 %v743_v54, %v743_v54  ;;  %v312_v2 = vmul.f32 %v745_v55, %v745_v55  ;;  %v313_v10 = vmul.f32 %v305_v6, %v305_v6  ;;  %v314_v5 = vmul.f32 %v306_v9, %v306_v9 }
 0x13a   :  { %v319_v8 = vadd.f32 %v312_v2, %v311_v0 }
 0x13b   :  { %v293_v52 = vpop.xlane.xlu0 %292 }
 0x13c   :  { %v302_v53 = vmul.f32 %v300_v50, %v293_v52  ;;  %v320_v12 = vadd.f32 %v319_v8, %v313_v10 }
 0x13e   :  { %v307_v56 = vsub.f32 %v144_v33, %v302_v53  ;;  %v308_v57 = vsub.f32 %v190_v14, %v302_v53  ;;  %v309_v58 = vsub.f32 %v236_v37, %v302_v53  ;;  %v310_v59 = vsub.f32 %v282_v39, %v302_v53  ;;  %v371_v36 = vpop.permute.xlu2 %370 }
 0x13f   :  { %v321_v13 = vadd.f32 %v320_v12, %v314_v5 }
 0x140   :  { %v315_v60 = vmul.f32 %v307_v56, %v307_v56  ;;  %v316_v61 = vmul.f32 %v308_v57, %v308_v57  ;;  %v317_v62 = vmul.f32 %v309_v58, %v309_v58  ;;  %v318_v3 = vmul.f32 %v310_v59, %v310_v59 }
 0x142   :  { %v324_v63 = vadd.f32 %v316_v61, %v315_v60 }
 0x144   :  { %v325_v4 = vadd.f32 %v324_v63, %v317_v62 }
 0x146   :  { %v326_v7 = vadd.f32 %v325_v4, %v318_v3 }
 0x148   :  { %327 = vadd.xlane.f32.xlu1 %v326_v7 }
 0x150   :  { %322 = vadd.xlane.f32.xlu1 %v321_v13 }
 0x169   :  { %390 = vperm.xlu1 %453, %v382_v16  }
 0x1bb   :  { %v328_v17 = vpop.xlane.xlu1 %327 }
 0x1bc   :  { %v330_v18 = vmul.f32 %v328_v17, %v300_v50 }
 0x1be   :  { %v332_v19 = vadd.f32 1e-05, %v330_v18 }
 0x1c0   :  { %456 = vrsqrt.f32 %v332_v19  ;;  %vm349_vm3 = vweird.f32 %v332_v19 }
 0x1c3   :  { %v323_v20 = vpop.xlane.xlu1 %322 }
 0x1c4   :  { %v329_v21 = vmul.f32 %v323_v20, %v300_v50 }
 0x1c6   :  { %v457_v22 = vpop.eup %456  ;;  %v331_v23 = vadd.f32 1e-05, %v329_v21 }
 0x1c7   :  { %v344_v24 = vmul.f32 %v457_v22, %v332_v19  ;;  %vm350_vm2 = vweird.f32 %v457_v22 }
 0x1c8   :  { %458 = vrsqrt.f32 %v331_v23  ;;  %vm351_vm4 = vmor %vm349_vm3, %vm350_vm2  ;;  %vm339_vm6 = vweird.f32 %v331_v23 }
 0x1c9   :  { %v345_v25 = vmul.f32 %v457_v22, %v344_v24 }
 0x1cb   :  { %v346_v26 = vmul.f32 0.5, %v345_v25 }
 0x1cd   :  { %v347_v28 = vsub.f32 1.5, %v346_v26 }
 0x1ce   :  { %v459_v29 = vpop.eup %458 }
 0x1cf   :  { %v348_v30 = vmul.f32 %v457_v22, %v347_v28  ;;  %v334_v31 = vmul.f32 %v459_v29, %v331_v23  ;;  %vm340_vm5 = vweird.f32 %v459_v29 }
 0x1d0   :  { %vm341_vm7 = vmor %vm339_vm6, %vm340_vm5 }
 0x1d1   :  { %v352_v14 = vsel %vm351_vm4, %v457_v22, %v348_v30  ;;  %v335_v32 = vmul.f32 %v459_v29, %v334_v31 }
 0x1d2   :  { %v357_v34 = vmul.f32 %v352_v14, %v307_v56  ;;  %v358_v37 = vmul.f32 %v352_v14, %v308_v57  ;;  %v359_v38 = vmul.f32 %v352_v14, %v309_v58  ;;  %v360_v39 = vmul.f32 %v352_v14, %v310_v59  ;;  %v386_v57 = vpop.permute.xlu0 %385 }
 0x1d3   :  { %v336_v33 = vmul.f32 0.5, %v335_v32 }
 0x1d4   :  { %v377_v41 = vmul.f32 %v371_v36, %v357_v34  ;;  %v378_v43 = vmul.f32 %v371_v36, %v358_v37  ;;  %v379_v44 = vmul.f32 %v371_v36, %v359_v38  ;;  %v380_v45 = vmul.f32 %v371_v36, %v360_v39 }
 0x1d5   :  { %v337_v35 = vsub.f32 1.5, %v336_v33 }
 0x1d7   :  { %v338_v40 = vmul.f32 %v459_v29, %v337_v35 }
 0x1d9   :  { %v342_v42 = vsel %vm341_vm7, %v459_v29, %v338_v40 }
 0x1da   :  { %v353_v46 = vmul.f32 %v342_v42, %v743_v54  ;;  %v354_v47 = vmul.f32 %v342_v42, %v745_v55  ;;  %v355_v48 = vmul.f32 %v342_v42, %v305_v6  ;;  %v356_v49 = vmul.f32 %v342_v42, %v306_v9 }
 0x1db   :  { %v391_v50 = vpop.permute.xlu1 %390 }
 0x1dc   :  { %v397_v51 = vadd.f32 %v391_v50, %v377_v41  ;;  %v398_v52 = vadd.f32 %v391_v50, %v378_v43  ;;  %v399_v53 = vadd.f32 %v391_v50, %v379_v44  ;;  %v400_v56 = vadd.f32 %v391_v50, %v380_v45 }
 0x1dd   :  { %v373_v58 = vmul.f32 %v366_v27, %v353_v46  ;;  %v374_v59 = vmul.f32 %v366_v27, %v354_v47  ;;  %v375_v60 = vmul.f32 %v366_v27, %v355_v48  ;;  %v376_v61 = vmul.f32 %v366_v27, %v356_v49 }
 0x1de   :  { %vm405_vm8 = vcmp.gt.f32.partialorder %v397_v51, 0.0  ;;  %vm406_vm9 = vcmp.gt.f32.partialorder %v398_v52, 0.0  ;;  %vm407_vm10 = vcmp.gt.f32.partialorder %v399_v53, 0.0  ;;  %vm408_vm11 = vcmp.gt.f32.partialorder %v400_v56, 0.0 }
 0x1df   :  { %v413_v62 = vmul.f32 0.1, %v397_v51  ;;  %v414_v54 = vmul.f32 0.1, %v398_v52  ;;  %v415_v63 = vmul.f32 0.1, %v399_v53  ;;  %v393_v55 = vadd.f32 %v386_v57, %v373_v58 }
 0x1e0   :  { %v416_v0 = vmul.f32 0.1, %v400_v56  ;;  %v394_v2 = vadd.f32 %v386_v57, %v374_v59  ;;  %v395_v3 = vadd.f32 %v386_v57, %v375_v60  ;;  %v396_v4 = vadd.f32 %v386_v57, %v376_v61 }
 0x1e1   :  { %v421_v6 = vsel %vm405_vm8, %v397_v51, %v413_v62  ;;  %v422_v7 = vsel %vm406_vm9, %v398_v52, %v414_v54  ;;  %v423_v8 = vsel %vm407_vm10, %v399_v53, %v415_v63  ;;  %vm401_vm12 = vcmp.gt.f32.partialorder %v393_v55, 0.0 }
 0x1e2   :  { %v424_v9 = vsel %vm408_vm11, %v400_v56, %v416_v0  ;;  %429 = vst [vmem:[%s793_s4 + $0x20] sm:$0xff] %v421_v6  ;;  %vm402_vm13 = vcmp.gt.f32.partialorder %v394_v2, 0.0  ;;  %vm403_vm14 = vcmp.gt.f32.partialorder %v395_v3, 0.0  ;;  %vm404_vm15 = vcmp.gt.f32.partialorder %v396_v4, 0.0 }
 0x1e3   :  { %430 = vst [vmem:[%s793_s4 + $0x28] sm:$0xff] %v422_v7  ;;  %v409_v10 = vmul.f32 0.1, %v393_v55  ;;  %v410_v1 = vmul.f32 0.1, %v394_v2 }
 0x1e4   :  { %431 = vst [vmem:[%s793_s4 + $0x30] sm:$0xff] %v423_v8  ;;  %v411_v11 = vmul.f32 0.1, %v395_v3  ;;  %v412_v12 = vmul.f32 0.1, %v396_v4 }
 0x1e5   :  { %432 = vst [vmem:[%s793_s4 + $0x38] sm:$0xff] %v424_v9  ;;  %v417_v5 = vsel %vm401_vm12, %v393_v55, %v409_v10  ;;  %v418_v13 = vsel %vm402_vm13, %v394_v2, %v410_v1 }
 0x1e6   :  { %v419_v15 = vsel %vm403_vm14, %v395_v3, %v411_v11  ;;  %v420_v16 = vsel %vm404_vm15, %v396_v4, %v412_v12  ;;  %425 = vst [vmem:[%s793_s4] sm:$0xff] %v417_v5 }
 0x1e7   :  { %426 = vst [vmem:[%s793_s4 + $0x8] sm:$0xff] %v418_v13 }
 0x1e8   :  { %427 = vst [vmem:[%s793_s4 + $0x10] sm:$0xff] %v419_v15 }
 0x1e9   :  { %428 = vst [vmem:[%s793_s4 + $0x18] sm:$0xff] %v420_v16 }

// kernel: _forward.20
= control target key start
LH: loop header
LB: loop body
LE: loop exit
PB: predicated region body
PF: predicated region fallthrough
CT: control target
= control target key end

     0   :  { %v188_v3 = vmov 0   ;;  %vm43_vm0 = vcmask 130048   ;;  %s299_s1 = inlined_call_operand.vmem [shape: f32[16,512], index: 1, kind: input, shape index: {}]   ;;  %s300_s0 = inlined_call_operand.vmem [shape: f32[21,16], index: 0, kind: input, shape index: {}]   ;;  %s301_s2 = inlined_call_operand.vmem [shape: f32[21,1], index: 2, kind: input, shape index: {}]   ;;  %s302_s3 = inlined_call_operand.vmem [shape: f32[21,512], index: 3, kind: output, shape index: {}]  }
   0x1   :  { %v23_v0 = vld [vmem:[%s299_s1 + $0x30] sm:$0xff]  ;;  %v24_v1 = vld [vmem:[%s299_s1 + $0x38] sm:$0xff]  ;;  %186 = vset.pattern.permute.xlu0 %v188_v3  ;;  %187 = vset.pattern.permute.xlu1 %v188_v3  ;;  %v14_v5 = vld [vmem:[%s300_s0] sm:$0xff] }
   0x2   :  { %v19_v2 = vld [vmem:[%s299_s1 + $0x10] sm:$0xff]  ;;  %119 = vmatpush.msra.mxu2 %v23_v0  ;;  %145 = vmatpush.msra.mxu3 %v24_v1  ;;  %v20_v4 = vld [vmem:[%s299_s1 + $0x18] sm:$0xff]  ;;  %v21_v6 = vld [vmem:[%s299_s1 + $0x20] sm:$0xff] }
   0x3   :  { %67 = vmatpush.msra.mxu0 %v21_v6  ;;  %v22_v7 = vld [vmem:[%s299_s1 + $0x28] sm:$0xff]  ;;  %v17_v8 = vld [vmem:[%s299_s1] sm:$0xff]  ;;  %v27_v11 = vld [vmem:[%s301_s2 + $0x10] sm:$0x1f] }
   0x4   :  { %120 = vmatpush.msra.mxu2 %v19_v2  ;;  %146 = vmatpush.msra.mxu3 %v20_v4  ;;  %v25_v9 = vld [vmem:[%s301_s2] sm:$0xff]  ;;  %v18_v10 = vld [vmem:[%s299_s1 + $0x8] sm:$0xff]  ;;  %v16_v14 = vld [vmem:[%s300_s0 + $0x10] sm:$0x1f] }
   0x5   :  { %179 = vmatmul.msk.f32.vlgmr.msra.gmra.mxu2 %vm43_vm0, %v14_v5  ;;  %182 = vmatmul.msk.f32.vlgmr.msra.gmra.mxu3 %vm43_vm0, %v14_v5  ;;  %v15_v12 = vld [vmem:[%s300_s0 + $0x8] sm:$0xff] }
   0x6   :  { %93 = vmatpush.msra.mxu1 %v22_v7  ;;  %68 = vmatpush.msra.mxu0 %v17_v8  ;;  %v26_v13 = vld [vmem:[%s301_s2 + $0x8] sm:$0xff] }
   0x7   :  { %173 = vmatmul.msk.f32.vlgmr.msra.gmra.mxu0 %vm43_vm0, %v14_v5  ;;  %30 = vperm.xlu0 %186, %v25_v9  }
   0x8   :  { %94 = vmatpush.msra.mxu1 %v18_v10  ;;  %40 = vperm.xlu1 %187, %v27_v11  }
   0x9   :  { %176 = vmatmul.msk.f32.vlgmr.msra.gmra.mxu1 %vm43_vm0, %v14_v5 }
   0xd   :  { %180 = vmatmul.msk.f32.gmra.mxu2 %vm43_vm0, %v15_v12  ;;  %183 = vmatmul.msk.f32.gmra.mxu3 %vm43_vm0, %v15_v12 }
   0xf   :  { %174 = vmatmul.msk.f32.gmra.mxu0 %vm43_vm0, %v15_v12  ;;  %35 = vperm.xlu0 %186, %v26_v13  }
  0x11   :  { %177 = vmatmul.msk.f32.gmra.mxu1 %vm43_vm0, %v15_v12 }
  0x15   :  { %181 = vmatmul.msk.f32.gmra.mxu2 %vm43_vm0, %v16_v14  ;;  %184 = vmatmul.msk.f32.gmra.mxu3 %vm43_vm0, %v16_v14 }
  0x17   :  { %175 = vmatmul.msk.f32.gmra.mxu0 %vm43_vm0, %v16_v14 }
  0x19   :  { %178 = vmatmul.msk.f32.gmra.mxu1 %vm43_vm0, %v16_v14 }
  0x79   :  { %v31_v15 = vpop.permute.xlu0 %30 }
  0x7a   :  { %v41_v33 = vpop.permute.xlu1 %40 }
  0x81   :  { %v36_v24 = vpop.permute.xlu0 %35 }
  0x84   :  { %v70_v16 = vpop.f32.mrf.mxu0 }
  0x85   :  { %v71_v17 = vadd.f32 %v70_v16, %v31_v15 }
  0x86   :  { %v96_v18 = vpop.f32.mrf.mxu1 }
  0x87   :  { %157 = vst [vmem:[%s302_s3] sm:$0xff] %v71_v17  ;;  %v97_v19 = vadd.f32 %v96_v18, %v31_v15 }
  0x88   :  { %v122_v20 = vpop.f32.mrf.mxu2  ;;  %v148_v21 = vpop.f32.mrf.mxu3 }
  0x89   :  { %158 = vst [vmem:[%s302_s3 + $0x8] sm:$0xff] %v97_v19  ;;  %v123_v22 = vadd.f32 %v122_v20, %v31_v15  ;;  %v149_v23 = vadd.f32 %v148_v21, %v31_v15 }
  0x8b   :  { %159 = vst [vmem:[%s302_s3 + $0x10] sm:$0xff] %v123_v22 }
  0x8c   :  { %160 = vst [vmem:[%s302_s3 + $0x18] sm:$0xff] %v149_v23  ;;  %v73_v25 = vpop.f32.mrf.mxu0 }
  0x8d   :  { %v74_v26 = vadd.f32 %v73_v25, %v36_v24 }
  0x8e   :  { %v99_v27 = vpop.f32.mrf.mxu1 }
  0x8f   :  { %161 = vst [vmem:[%s302_s3 + $0x20] sm:$0xff] %v74_v26  ;;  %v100_v28 = vadd.f32 %v99_v27, %v36_v24 }
  0x90   :  { %v125_v29 = vpop.f32.mrf.mxu2  ;;  %v151_v30 = vpop.f32.mrf.mxu3 }
  0x91   :  { %162 = vst [vmem:[%s302_s3 + $0x28] sm:$0xff] %v100_v28  ;;  %v126_v31 = vadd.f32 %v125_v29, %v36_v24  ;;  %v152_v32 = vadd.f32 %v151_v30, %v36_v24 }
  0x93   :  { %163 = vst [vmem:[%s302_s3 + $0x30] sm:$0xff] %v126_v31 }
  0x94   :  { %164 = vst [vmem:[%s302_s3 + $0x38] sm:$0xff] %v152_v32  ;;  %v76_v34 = vpop.f32.mrf.mxu0 }
  0x95   :  { %v77_v35 = vadd.f32 %v76_v34, %v41_v33 }
  0x96   :  { %v102_v36 = vpop.f32.mrf.mxu1 }
  0x97   :  { %165 = vst [vmem:[%s302_s3 + $0x40] sm:$0x1f] %v77_v35  ;;  %v103_v37 = vadd.f32 %v102_v36, %v41_v33 }
  0x98   :  { %v128_v38 = vpop.f32.mrf.mxu2  ;;  %v154_v39 = vpop.f32.mrf.mxu3 }
  0x99   :  { %166 = vst [vmem:[%s302_s3 + $0x48] sm:$0x1f] %v103_v37  ;;  %v129_v40 = vadd.f32 %v128_v38, %v41_v33  ;;  %v155_v41 = vadd.f32 %v154_v39, %v41_v33 }
  0x9b   :  { %167 = vst [vmem:[%s302_s3 + $0x50] sm:$0x1f] %v129_v40 }
  0x9c   :  { %168 = vst [vmem:[%s302_s3 + $0x58] sm:$0x1f] %v155_v41 }

// kernel: _forward.21
= control target key start
LH: loop header
LB: loop body
LE: loop exit
PB: predicated region body
PF: predicated region fallthrough
CT: control target
= control target key end

     0   :  { %v26_v0 = vlaneseq  ;;  %s972_s0 = inlined_call_operand.vmem [shape: f32[2,7,768], index: 0, kind: input, shape index: {}]   ;;  %s973_s2 = inlined_call_operand.vmem [shape: f32[1,7,768], index: 2, kind: input, shape index: {}]   ;;  %s974_s1 = inlined_call_operand.vmem [shape: f32[1,7,768], index: 1, kind: input, shape index: {}]   ;;  %s975_s3 = inlined_call_operand.vmem [shape: f32[2,7,768], index: 3, kind: output, shape index: {}]  }
   0x1   :  { %v14_v1 = vld [vmem:[%s972_s0] sm:$0x7f]  ;;  %v15_v4 = vld [vmem:[%s972_s0 + $0x8] sm:$0x7f]  ;;  %v16_v6 = vld [vmem:[%s972_s0 + $0x10] sm:$0x7f] }
   0x2   :  { %v479_v2 = vshrl.u32 %v26_v0, 7  ;;  %v372_v3 = vmul.f32 -1.442695, %v14_v1  ;;  %v373_v5 = vmul.f32 -1.442695, %v15_v4 }
   0x3   :  { %v374_v8 = vmul.f32 -1.442695, %v16_v6  ;;  %v17_v12 = vld [vmem:[%s972_s0 + $0x18] sm:$0x7f]  ;;  %v18_v18 = vld [vmem:[%s972_s0 + $0x20] sm:$0x7f] }
   0x4   :  { %vm29_vm0 = vcmp.ge.s32.totalorder %v479_v2, 2  ;;  %vm30_vm1 = vcmp.lt.s32.totalorder %v479_v2, 4  ;;  %384 = vpow2.f32 %v372_v3  ;;  %v375_v16 = vmul.f32 -1.442695, %v17_v12  ;;  %v517_v27 = vld [vmem:[%s973_s2] sm:$0x7f] }
   0x5   :  { %vm489_vm2 = vmand %vm29_vm0, %vm30_vm1  ;;  %386 = vpow2.f32 %v373_v5  ;;  %v376_v25 = vmul.f32 -1.442695, %v18_v18  ;;  %v19_v35 = vld [vmem:[%s972_s0 + $0x28] sm:$0x7f]  ;;  %v540_v39 = vld [vmem:[%s973_s2 + $0x10] sm:$0x7f] }
   0x6   :  { %v260_v9 = vsel %vm489_vm2, %v14_v1, 0.0  ;;  %v261_v10 = vsel %vm489_vm2, %v15_v4, 0.0  ;;  %v262_v11 = vsel %vm489_vm2, %v16_v6, 0.0  ;;  %388 = vpow2.f32 %v374_v8  ;;  %v532_v37 = vld [vmem:[%s973_s2 + $0x8] sm:$0x7f] }
   0x7   :  { %v272_v13 = vmul.f32 1.442695, %v260_v9  ;;  %v274_v14 = vmul.f32 1.442695, %v261_v10  ;;  %v276_v15 = vmul.f32 1.442695, %v262_v11 }
   0x8   :  { %v263_v17 = vsel %vm489_vm2, %v17_v12, 0.0  ;;  %v264_v23 = vsel %vm489_vm2, %v18_v18, 0.0  ;;  %v377_v45 = vmul.f32 -1.442695, %v19_v35  ;;  %v566_v51 = vld [vmem:[%s972_s0 + $0x30] sm:$0x7f] }
   0x9   :  { %390 = vpow2.f32 %v272_v13  ;;  %v278_v22 = vmul.f32 1.442695, %v263_v17  ;;  %v280_v30 = vmul.f32 1.442695, %v264_v23  ;;  %vm28_vm8 = vcmp.lt.s32.totalorder %v479_v2, 2 }
   0xa   :  { %v385_v19 = vpop.eup %384  ;;  %392 = vpow2.f32 %v274_v14  ;;  %v265_v58 = vsel %vm489_vm2, %v19_v35, 0.0  ;;  %v586_v62 = vld [vmem:[%s973_s2 + $0x18] sm:$0x7f]  ;;  %v378_v63 = vmul.f32 -1.442695, %v566_v51 }
   0xb   :  { %v387_v20 = vpop.eup %386  ;;  %v507_v21 = vadd.f32 1.0, %v385_v19  ;;  %394 = vpow2.f32 %v276_v15  ;;  %v282_v14 = vmul.f32 1.442695, %v265_v58 }
   0xc   :  { %v511_v24 = vadd.f32 1.0, %v387_v20  ;;  %396 = vpow2.f32 %v375_v16  ;;  %v389_v26 = vpop.eup %388  ;;  %v618_v20 = vld [vmem:[%s974_s1] sm:$0x7f] }
   0xd   :  { %398 = vrcp.f32 %v507_v21  ;;  %v89_v28 = vand.u32 2147483647, %v507_v21  ;;  %v91_v29 = vand.u32 2147483648, %v507_v21  ;;  %v524_v34 = vadd.f32 1.0, %v389_v26  ;;  %v632_v26 = vld [vmem:[%s974_s1 + $0x8] sm:$0x7f] }
   0xe   :  { %400 = vrcp.f32 %v511_v24  ;;  %v104_v32 = vand.u32 2147483647, %v511_v24  ;;  %v106_v33 = vand.u32 2147483648, %v511_v24  ;;  %vm85_vm3 = vweird.f32 %v507_v21 }
   0xf   :  { %v391_v31 = vpop.eup %390  ;;  %402 = vpow2.f32 %v278_v22  ;;  %vm100_vm4 = vweird.f32 %v511_v24  ;;  %vm542_vm5 = vcmp.eq.f32.partialorder %v89_v28, 8.507059e+37  ;;  %v546_v42 = vor.u32 1.1754944e-38, %v91_v29 }
  0x10   :  { %v393_v36 = vpop.eup %392  ;;  %404 = vpow2.f32 %v376_v25  ;;  %v549_v43 = vmul.f32 %v391_v31, %v517_v27  ;;  %v119_v44 = vand.u32 2147483647, %v524_v34  ;;  %vm552_vm6 = vcmp.eq.f32.partialorder %v104_v32, 8.507059e+37 }
  0x11   :  { %v395_v38 = vpop.eup %394  ;;  %406 = vrcp.f32 %v524_v34  ;;  %v556_v48 = vor.u32 1.1754944e-38, %v106_v33  ;;  %v559_v49 = vmul.f32 %v393_v36, %v532_v37  ;;  %vm115_vm7 = vweird.f32 %v524_v34 }
  0x12   :  { %v397_v40 = vpop.eup %396  ;;  %408 = vpow2.f32 %v280_v30  ;;  %v121_v54 = vand.u32 2147483648, %v524_v34  ;;  %v574_v57 = vmul.f32 %v395_v38, %v540_v39  ;;  %vm579_vm11 = vcmp.eq.f32.partialorder %v119_v44, 8.507059e+37 }
  0x13   :  { %v399_v46 = vpop.eup %398  ;;  %v561_v50 = vadd.f32 1.0, %v397_v40  ;;  %410 = vpow2.f32 %v377_v45 }
  0x14   :  { %v401_v52 = vpop.eup %400  ;;  %v81_v53 = vmul.f32 %v399_v46, %v507_v21  ;;  %vm86_vm9 = vweird.f32 %v399_v46  ;;  %v122_v9 = vor.u32 1.1754944e-38, %v121_v54 }
  0x15   :  { %v403_v55 = vpop.eup %402  ;;  %v96_v56 = vmul.f32 %v401_v52, %v511_v24  ;;  %412 = vrcp.f32 %v561_v50  ;;  %vm101_vm10 = vweird.f32 %v401_v52  ;;  %v134_v3 = vand.u32 2147483647, %v561_v50  ;;  %vm598_vm13 = vmor %vm85_vm3, %vm86_vm9 }
  0x16   :  { %v405_v59 = vpop.eup %404  ;;  %v82_v60 = vsub.f32 1.0, %v81_v53  ;;  %v136_v4 = vand.u32 2147483648, %v561_v50  ;;  %vm130_vm12 = vweird.f32 %v561_v50  ;;  %v603_v13 = vmul.f32 %v403_v55, %v586_v62  ;;  %vm609_vm14 = vmor %vm100_vm4, %vm101_vm10 }
  0x17   :  { %v407_v0 = vpop.eup %406  ;;  %v97_v1 = vsub.f32 1.0, %v96_v56  ;;  %v591_v5 = vadd.f32 1.0, %v405_v59  ;;  %vm620_vm0 = vcmp.eq.f32.partialorder %v134_v3, 8.507059e+37 }
  0x18   :  { %v83_v6 = vmul.f32 %v399_v46, %v82_v60  ;;  %v111_v8 = vmul.f32 %v407_v0, %v524_v34  ;;  %v409_v10 = vpop.eup %408  ;;  %vm116_vm15 = vweird.f32 %v407_v0  ;;  %v137_v23 = vor.u32 1.1754944e-38, %v136_v4  ;;  %v660_v34 = vld [vmem:[%s973_s2 + $0x20] sm:$0x7f] }
  0x19   :  { %v98_v12 = vmul.f32 %v401_v52, %v97_v1  ;;  %414 = vrcp.f32 %v591_v5  ;;  %v411_v15 = vpop.eup %410  ;;  %vm145_vm1 = vweird.f32 %v591_v5  ;;  %v149_v30 = vand.u32 2147483647, %v591_v5  ;;  %vm645_vm3 = vmor %vm115_vm7, %vm116_vm15 }
  0x1a   :  { %v84_v16 = vadd.f32 %v399_v46, %v83_v6  ;;  %v112_v18 = vsub.f32 1.0, %v111_v8  ;;  %416 = vpow2.f32 %v378_v63  ;;  %v625_v24 = vadd.f32 1.0, %v411_v15  ;;  %v720_v6 = vld [vmem:[%s974_s1 + $0x18] sm:$0x7f] }
  0x1b   :  { %v613_v19 = vpop.eup %412  ;;  %v99_v21 = vadd.f32 %v401_v52, %v98_v12  ;;  %418 = vpow2.f32 %v282_v14  ;;  %v151_v53 = vand.u32 2147483648, %v591_v5  ;;  %v324_v56 = vmul.f32 %v409_v10, %v660_v34 }
  0x1c   :  { %v88_v25 = vsel %vm598_vm13, %v399_v46, %v84_v16  ;;  %v113_v28 = vmul.f32 %v407_v0, %v112_v18  ;;  %v126_v29 = vmul.f32 %v613_v19, %v561_v50  ;;  %vm131_vm4 = vweird.f32 %v613_v19  ;;  %v21_v16 = vld [vmem:[%s972_s0 + $0x38] sm:$0x7f] }
  0x1d   :  { %v93_v31 = vsel %vm542_vm5, %v546_v42, %v88_v25  ;;  %v103_v32 = vsel %vm609_vm14, %v401_v52, %v99_v21  ;;  %420 = vrcp.f32 %v625_v24  ;;  %vm698_vm5 = vmor %vm130_vm12, %vm131_vm4  ;;  %vm703_vm7 = vcmp.eq.f32.partialorder %v149_v30, 8.507059e+37 }
  0x1e   :  { %v302_v35 = vadd.f32 %v618_v20, %v93_v31  ;;  %v332_v36 = vsel %vm489_vm2, %v549_v43, %v93_v31  ;;  %v108_v38 = vsel %vm552_vm6, %v556_v48, %v103_v32  ;;  %v114_v40 = vadd.f32 %v407_v0, %v113_v28  ;;  %v669_v43 = vld [vmem:[%s974_s1 + $0x10] sm:$0x7f] }
  0x1f   :  { %v415_v41 = vpop.eup %414  ;;  %v303_v42 = vadd.f32 %v632_v26, %v108_v38  ;;  %v333_v44 = vsel %vm489_vm2, %v559_v49, %v108_v38  ;;  %v127_v45 = vsub.f32 1.0, %v126_v29  ;;  %v164_v3 = vand.u32 2147483647, %v625_v24 }
  0x20   :  { %v417_v46 = vpop.eup %416  ;;  %v344_v47 = vsel %vm28_vm8, %v302_v35, %v332_v36  ;;  %v118_v48 = vsel %vm645_vm3, %v407_v0, %v114_v40  ;;  %v141_v52 = vmul.f32 %v415_v41, %v591_v5  ;;  %vm146_vm6 = vweird.f32 %v415_v41 }
  0x21   :  { %356 = vst [vmem:[%s975_s3] sm:$0x7f] %v344_v47  ;;  %v345_v49 = vsel %vm28_vm8, %v303_v42, %v333_v44  ;;  %v123_v54 = vsel %vm579_vm11, %v122_v9, %v118_v48  ;;  %v128_v55 = vmul.f32 %v613_v19, %v127_v45  ;;  %v419_v63 = vpop.eup %418  ;;  %v713_v50 = vadd.f32 1.0, %v417_v46  ;;  %vm732_vm10 = vmor %vm145_vm1, %vm146_vm6  ;;  %v23_v47 = vld [vmem:[%s972_s0 + $0x48] sm:$0x7f] }
  0x22   :  { %357 = vst [vmem:[%s975_s3 + $0x8] sm:$0x7f] %v345_v49  ;;  %v304_v58 = vadd.f32 %v669_v43, %v123_v54  ;;  %v334_v59 = vsel %vm489_vm2, %v574_v57, %v123_v54  ;;  %v142_v61 = vsub.f32 1.0, %v141_v52  ;;  %v711_v57 = vld [vmem:[%s973_s2 + $0x28] sm:$0x7f]  ;;  %v152_v9 = vor.u32 1.1754944e-38, %v151_v53 }
  0x23   :  { %v129_v0 = vadd.f32 %v613_v19, %v128_v55  ;;  %vm160_vm9 = vweird.f32 %v625_v24  ;;  %v421_v10 = vpop.eup %420  ;;  %v166_v14 = vand.u32 2147483648, %v625_v24  ;;  %422 = vrcp.f32 %v713_v50  ;;  %v24_v49 = vld [vmem:[%s972_s0 + $0x50] sm:$0x7f] }
  0x24   :  { %v346_v4 = vsel %vm28_vm8, %v304_v58, %v334_v59  ;;  %v143_v8 = vmul.f32 %v415_v41, %v142_v61  ;;  %v266_v15 = vsel %vm489_vm2, %v566_v51, 0.0  ;;  %v156_v18 = vmul.f32 %v421_v10, %v625_v24  ;;  %v755_v51 = vld [vmem:[%s974_s1 + $0x20] sm:$0x7f]  ;;  %v795_v24 = vld [vmem:[%s974_s1 + $0x28] sm:$0x7f] }
  0x25   :  { %358 = vst [vmem:[%s975_s3 + $0x10] sm:$0x7f] %v346_v4  ;;  %v133_v11 = vsel %vm698_vm5, %v613_v19, %v129_v0  ;;  %v325_v19 = vmul.f32 %v419_v63, %v711_v57  ;;  %vm161_vm11 = vweird.f32 %v421_v10  ;;  %vm757_vm12 = vcmp.eq.f32.partialorder %v164_v3, 8.507059e+37 }
  0x26   :  { %v138_v17 = vsel %vm620_vm0, %v137_v23, %v133_v11  ;;  %v144_v5 = vadd.f32 %v415_v41, %v143_v8  ;;  %v22_v23 = vld [vmem:[%s972_s0 + $0x40] sm:$0x7f]  ;;  %v157_v29 = vsub.f32 1.0, %v156_v18  ;;  %v284_v30 = vmul.f32 1.442695, %v266_v15  ;;  %vm780_vm13 = vmor %vm160_vm9, %vm161_vm11 }
  0x27   :  { %v305_v21 = vadd.f32 %v720_v6, %v138_v17  ;;  %v335_v25 = vsel %vm489_vm2, %v603_v13, %v138_v17  ;;  %v379_v13 = vmul.f32 -1.442695, %v21_v16  ;;  %v167_v33 = vor.u32 1.1754944e-38, %v166_v14 }
  0x28   :  { %v148_v28 = vsel %vm732_vm10, %v415_v41, %v144_v5  ;;  %v179_v35 = vand.u32 2147483647, %v713_v50  ;;  %v158_v40 = vmul.f32 %v421_v10, %v157_v29  ;;  %424 = vpow2.f32 %v284_v30 }
  0x29   :  { %v347_v31 = vsel %vm28_vm8, %v305_v21, %v335_v25  ;;  %v153_v32 = vsel %vm703_vm7, %v152_v9, %v148_v28  ;;  %v423_v41 = vpop.eup %422  ;;  %v181_v44 = vand.u32 2147483648, %v713_v50  ;;  %426 = vpow2.f32 %v379_v13 }
  0x2a   :  { %359 = vst [vmem:[%s975_s3 + $0x18] sm:$0x7f] %v347_v31  ;;  %v306_v36 = vadd.f32 %v755_v51, %v153_v32  ;;  %v336_v38 = vsel %vm489_vm2, %v324_v56, %v153_v32  ;;  %v267_v45 = vsel %vm489_vm2, %v21_v16, 0.0  ;;  %v380_v46 = vmul.f32 -1.442695, %v22_v23 }
  0x2b   :  { %v159_v52 = vadd.f32 %v421_v10, %v158_v40  ;;  %v171_v53 = vmul.f32 %v423_v41, %v713_v50  ;;  %vm175_vm14 = vweird.f32 %v713_v50  ;;  %vm176_vm15 = vweird.f32 %v423_v41  ;;  %v25_v50 = vld [vmem:[%s972_s0 + $0x58] sm:$0x7f] }
  0x2c   :  { %v348_v48 = vsel %vm28_vm8, %v306_v36, %v336_v38  ;;  %v286_v54 = vmul.f32 1.442695, %v267_v45  ;;  %428 = vpow2.f32 %v380_v46  ;;  %v268_v55 = vsel %vm489_vm2, %v22_v23, 0.0  ;;  %vm823_vm1 = vmor %vm175_vm14, %vm176_vm15 }
  0x2d   :  { %360 = vst [vmem:[%s975_s3 + $0x20] sm:$0x7f] %v348_v48  ;;  %v163_v56 = vsel %vm780_vm13, %v421_v10, %v159_v52  ;;  %v172_v58 = vsub.f32 1.0, %v171_v53  ;;  %v381_v59 = vmul.f32 -1.442695, %v23_v47  ;;  %v269_v60 = vsel %vm489_vm2, %v23_v47, 0.0 }
  0x2e   :  { %v168_v61 = vsel %vm757_vm12, %v167_v33, %v163_v56  ;;  %vm813_vm0 = vcmp.eq.f32.partialorder %v179_v35, 8.507059e+37  ;;  %v182_v0 = vor.u32 1.1754944e-38, %v181_v44  ;;  %v382_v1 = vmul.f32 -1.442695, %v24_v49  ;;  %v425_v3 = vpop.eup %424 }
  0x2f   :  { %v307_v4 = vadd.f32 %v795_v24, %v168_v61  ;;  %v337_v8 = vsel %vm489_vm2, %v325_v19, %v168_v61  ;;  %v173_v9 = vmul.f32 %v423_v41, %v172_v58  ;;  %430 = vpow2.f32 %v286_v54  ;;  %v427_v10 = vpop.eup %426 }
  0x30   :  { %v288_v12 = vmul.f32 1.442695, %v268_v55  ;;  %432 = vpow2.f32 %v381_v59  ;;  %v290_v14 = vmul.f32 1.442695, %v269_v60  ;;  %v270_v15 = vsel %vm489_vm2, %v24_v49, 0.0 }
  0x31   :  { %v349_v16 = vsel %vm28_vm8, %v307_v4, %v337_v8  ;;  %v174_v17 = vadd.f32 %v423_v41, %v173_v9  ;;  %v326_v5 = vmul.f32 %v425_v3, %v517_v27  ;;  %v75_v18 = vadd.f32 1.0, %v427_v10 }
  0x32   :  { %v429_v19 = vpop.eup %428  ;;  %361 = vst [vmem:[%s975_s3 + $0x28] sm:$0x7f] %v349_v16  ;;  %434 = vpow2.f32 %v382_v1  ;;  %v292_v25 = vmul.f32 1.442695, %v270_v15  ;;  %v383_v23 = vmul.f32 -1.442695, %v25_v50 }
  0x33   :  { %v178_v21 = vsel %vm823_vm1, %v423_v41, %v174_v17  ;;  %436 = vrcp.f32 %v75_v18  ;;  %v76_v27 = vadd.f32 1.0, %v429_v19  ;;  %v194_v31 = vand.u32 2147483647, %v75_v18 }
  0x34   :  { %v183_v22 = vsel %vm813_vm0, %v182_v0, %v178_v21  ;;  %438 = vpow2.f32 %v288_v12  ;;  %v196_v33 = vand.u32 2147483648, %v75_v18  ;;  %v271_v38 = vsel %vm489_vm2, %v25_v50, 0.0 }
  0x35   :  { %v431_v28 = vpop.eup %430  ;;  %v308_v29 = vadd.f32 %v618_v20, %v183_v22  ;;  %v338_v30 = vsel %vm489_vm2, %v326_v5, %v183_v22  ;;  %440 = vpow2.f32 %v290_v14  ;;  %v209_v42 = vand.u32 2147483647, %v76_v27 }
  0x36   :  { %v433_v13 = vpop.eup %432  ;;  %442 = vrcp.f32 %v76_v27  ;;  %v211_v44 = vand.u32 2147483648, %v76_v27  ;;  %vm190_vm3 = vweird.f32 %v75_v18  ;;  %vm857_vm4 = vcmp.eq.f32.partialorder %v194_v31, 8.507059e+37 }
  0x37   :  { %v350_v32 = vsel %vm28_vm8, %v308_v29, %v338_v30  ;;  %v847_v35 = vadd.f32 1.0, %v433_v13  ;;  %444 = vpow2.f32 %v292_v25  ;;  %v197_v48 = vor.u32 1.1754944e-38, %v196_v33 }
  0x38   :  { %v435_v36 = vpop.eup %434  ;;  %362 = vst [vmem:[%s975_s3 + $0x30] sm:$0x7f] %v350_v32  ;;  %446 = vpow2.f32 %v383_v23  ;;  %v327_v52 = vmul.f32 %v431_v28, %v532_v37  ;;  %v294_v54 = vmul.f32 1.442695, %v271_v38  ;;  %vm205_vm6 = vweird.f32 %v76_v27 }
  0x39   :  { %v437_v20 = vpop.eup %436  ;;  %448 = vrcp.f32 %v847_v35  ;;  %v855_v45 = vadd.f32 1.0, %v435_v36  ;;  %v224_v59 = vand.u32 2147483647, %v847_v35  ;;  %vm865_vm7 = vcmp.eq.f32.partialorder %v209_v42, 8.507059e+37 }
  0x3a   :  { %v439_v40 = vpop.eup %438  ;;  %v186_v41 = vmul.f32 %v437_v20, %v75_v18  ;;  %vm191_vm5 = vweird.f32 %v437_v20  ;;  %v212_v37 = vor.u32 1.1754944e-38, %v211_v44  ;;  %vm220_vm11 = vweird.f32 %v847_v35 }
  0x3b   :  { %v441_v46 = vpop.eup %440  ;;  %450 = vrcp.f32 %v855_v45  ;;  %v328_v58 = vmul.f32 %v439_v40, %v540_v39  ;;  %vm871_vm9 = vmor %vm190_vm3, %vm191_vm5  ;;  %v226_v10 = vand.u32 2147483648, %v847_v35  ;;  %vm880_vm12 = vcmp.eq.f32.partialorder %v224_v59, 8.507059e+37 }
  0x3c   :  { %v443_v53 = vpop.eup %442  ;;  %v187_v49 = vsub.f32 1.0, %v186_v41  ;;  %v329_v0 = vmul.f32 %v441_v46, %v586_v62  ;;  %452 = vpow2.f32 %v294_v54  ;;  %v239_v5 = vand.u32 2147483647, %v855_v45 }
  0x3d   :  { %v445_v55 = vpop.eup %444  ;;  %v201_v56 = vmul.f32 %v443_v53, %v76_v27  ;;  %vm206_vm10 = vweird.f32 %v443_v53  ;;  %v241_v19 = vand.u32 2147483648, %v855_v45  ;;  %v227_v27 = vor.u32 1.1754944e-38, %v226_v10 }
  0x3e   :  { %v447_v60 = vpop.eup %446  ;;  %v188_v61 = vmul.f32 %v437_v20, %v187_v49  ;;  %v330_v12 = vmul.f32 %v445_v55, %v660_v34  ;;  %vm889_vm13 = vmor %vm205_vm6, %vm206_vm10  ;;  %vm235_vm0 = vweird.f32 %v855_v45  ;;  %vm914_vm3 = vcmp.eq.f32.partialorder %v239_v5, 8.507059e+37 }
  0x3f   :  { %v449_v1 = vpop.eup %448  ;;  %v202_v4 = vsub.f32 1.0, %v201_v56  ;;  %v876_v39 = vadd.f32 1.0, %v447_v60  ;;  %v242_v38 = vor.u32 1.1754944e-38, %v241_v19 }
  0x40   :  { %v189_v8 = vadd.f32 %v437_v20, %v188_v61  ;;  %v216_v9 = vmul.f32 %v449_v1, %v847_v35  ;;  %vm221_vm14 = vweird.f32 %v449_v1 }
  0x41   :  { %v203_v11 = vmul.f32 %v443_v53, %v202_v4  ;;  %454 = vrcp.f32 %v876_v39  ;;  %v451_v14 = vpop.eup %450  ;;  %vm905_vm15 = vmor %vm220_vm11, %vm221_vm14  ;;  %vm250_vm5 = vweird.f32 %v876_v39  ;;  %v254_v44 = vand.u32 2147483647, %v876_v39 }
  0x42   :  { %v193_v15 = vsel %vm871_vm9, %v437_v20, %v189_v8  ;;  %v217_v17 = vsub.f32 1.0, %v216_v9  ;;  %v231_v34 = vmul.f32 %v451_v14, %v855_v45  ;;  %vm236_vm1 = vweird.f32 %v451_v14  ;;  %v453_v30 = vpop.eup %452 }
  0x43   :  { %v198_v18 = vsel %vm857_vm4, %v197_v48, %v193_v15  ;;  %v204_v50 = vadd.f32 %v443_v53, %v203_v11  ;;  %vm926_vm4 = vmor %vm235_vm0, %vm236_vm1  ;;  %v256_v47 = vand.u32 2147483648, %v876_v39  ;;  %vm255_vm9 = vcmp.eq.f32.partialorder %v254_v44, 8.507059e+37 }
  0x44   :  { %v309_v21 = vadd.f32 %v632_v26, %v198_v18  ;;  %v339_v25 = vsel %vm489_vm2, %v327_v52, %v198_v18  ;;  %v218_v22 = vmul.f32 %v449_v1, %v217_v17  ;;  %v232_v29 = vsub.f32 1.0, %v231_v34 }
  0x45   :  { %v208_v23 = vsel %vm889_vm13, %v443_v53, %v204_v50  ;;  %v257_v59 = vor.u32 1.1754944e-38, %v256_v47  ;;  %v331_v61 = vmul.f32 %v453_v30, %v711_v57 }
  0x46   :  { %v351_v26 = vsel %vm28_vm8, %v309_v21, %v339_v25  ;;  %v213_v13 = vsel %vm865_vm7, %v212_v37, %v208_v23  ;;  %v219_v31 = vadd.f32 %v449_v1, %v218_v22  ;;  %v233_v20 = vmul.f32 %v451_v14, %v232_v29 }
  0x47   :  { %v455_v33 = vpop.eup %454  ;;  %363 = vst [vmem:[%s975_s3 + $0x38] sm:$0x7f] %v351_v26  ;;  %v310_v35 = vadd.f32 %v669_v43, %v213_v13  ;;  %v340_v36 = vsel %vm489_vm2, %v328_v58, %v213_v13 }
  0x48   :  { %v223_v40 = vsel %vm905_vm15, %v449_v1, %v219_v31  ;;  %v246_v42 = vmul.f32 %v455_v33, %v876_v39  ;;  %v234_v46 = vadd.f32 %v451_v14, %v233_v20  ;;  %vm251_vm6 = vweird.f32 %v455_v33 }
  0x49   :  { %v352_v43 = vsel %vm28_vm8, %v310_v35, %v340_v36  ;;  %v228_v45 = vsel %vm880_vm12, %v227_v27, %v223_v40  ;;  %vm252_vm7 = vmor %vm250_vm5, %vm251_vm6 }
  0x4a   :  { %364 = vst [vmem:[%s975_s3 + $0x40] sm:$0x7f] %v352_v43  ;;  %v311_v48 = vadd.f32 %v720_v6, %v228_v45  ;;  %v341_v52 = vsel %vm489_vm2, %v329_v0, %v228_v45  ;;  %v247_v53 = vsub.f32 1.0, %v246_v42  ;;  %v238_v49 = vsel %vm926_vm4, %v451_v14, %v234_v46 }
  0x4b   :  { %v243_v55 = vsel %vm914_vm3, %v242_v38, %v238_v49 }
  0x4c   :  { %v353_v54 = vsel %vm28_vm8, %v311_v48, %v341_v52  ;;  %v248_v56 = vmul.f32 %v455_v33, %v247_v53  ;;  %v312_v6 = vadd.f32 %v755_v51, %v243_v55  ;;  %v342_v58 = vsel %vm489_vm2, %v330_v12, %v243_v55 }
  0x4d   :  { %365 = vst [vmem:[%s975_s3 + $0x48] sm:$0x7f] %v353_v54 }
  0x4e   :  { %v249_v60 = vadd.f32 %v455_v33, %v248_v56  ;;  %v354_v63 = vsel %vm28_vm8, %v312_v6, %v342_v58 }
  0x4f   :  { %366 = vst [vmem:[%s975_s3 + $0x50] sm:$0x7f] %v354_v63 }
  0x50   :  { %v253_v37 = vsel %vm252_vm7, %v455_v33, %v249_v60 }
  0x51   :  { %v258_v51 = vsel %vm255_vm9, %v257_v59, %v253_v37 }
  0x52   :  { %v313_v0 = vadd.f32 %v795_v24, %v258_v51  ;;  %v343_v1 = vsel %vm489_vm2, %v331_v61, %v258_v51 }
  0x54   :  { %v355_v3 = vsel %vm28_vm8, %v313_v0, %v343_v1 }
  0x55   :  { %367 = vst [vmem:[%s975_s3 + $0x58] sm:$0x7f] %v355_v3 }

// kernel: _forward.16
= control target key start
LH: loop header
LB: loop body
LE: loop exit
PB: predicated region body
PF: predicated region fallthrough
CT: control target
= control target key end

     0   :  { %v90_v2 = vmov 0   ;;  %vm37_vm0 = vcmask 130048   ;;  %s144_s1 = inlined_call_operand.vmem [shape: f32[16,128], index: 1, kind: input, shape index: {}]   ;;  %s145_s0 = inlined_call_operand.vmem [shape: f32[21,16], index: 0, kind: input, shape index: {}]   ;;  %s146_s2 = inlined_call_operand.vmem [shape: f32[21,1], index: 2, kind: input, shape index: {}]   ;;  %s147_s3 = inlined_call_operand.vmem [shape: f32[21,128], index: 3, kind: output, shape index: {}]  }
   0x1   :  { %v18_v0 = vld [vmem:[%s144_s1 + $0x8] sm:$0xff]  ;;  %v17_v1 = vld [vmem:[%s144_s1] sm:$0xff]  ;;  %88 = vset.pattern.permute.xlu0 %v90_v2  ;;  %89 = vset.pattern.permute.xlu1 %v90_v2  ;;  %v16_v6 = vld [vmem:[%s145_s0 + $0x10] sm:$0x1f] }
   0x2   :  { %61 = vmatpush.msra.mxu0 %v18_v0  ;;  %83 = vmatpush.msra.mxu1 %v18_v0  ;;  %v14_v3 = vld [vmem:[%s145_s0] sm:$0xff]  ;;  %v15_v5 = vld [vmem:[%s145_s0 + $0x8] sm:$0xff]  ;;  %v21_v7 = vld [vmem:[%s146_s2 + $0x10] sm:$0x1f] }
   0x3   :  { %v19_v4 = vld [vmem:[%s146_s2] sm:$0xff]  ;;  %84 = vmatpush.msra.mxu2 %v18_v0  ;;  %34 = vperm.xlu1 %89, %v21_v7   ;;  %v20_v8 = vld [vmem:[%s146_s2 + $0x8] sm:$0xff] }
   0x4   :  { %24 = vperm.xlu0 %88, %v19_v4   ;;  %62 = vmatpush.msra.mxu0 %v17_v1 }
   0x5   :  { %85 = vmatpush.msra.mxu1 %v17_v1  ;;  %86 = vmatpush.msra.mxu2 %v17_v1 }
   0x6   :  { %80 = vmatmul.msk.f32.vlgmr.msra.gmra.mxu0 %vm37_vm0, %v14_v3  ;;  %81 = vmatmul.msk.f32.vlgmr.msra.gmra.mxu1 %vm37_vm0, %v15_v5 }
   0x7   :  { %82 = vmatmul.msk.f32.vlgmr.msra.gmra.mxu2 %vm37_vm0, %v16_v6 }
   0xc   :  { %29 = vperm.xlu0 %88, %v20_v8  }
  0x75   :  { %v35_v15 = vpop.permute.xlu1 %34 }
  0x76   :  { %v25_v9 = vpop.permute.xlu0 %24 }
  0x7e   :  { %v30_v11 = vpop.permute.xlu0 %29 }
  0x83   :  { %v64_v10 = vpop.f32.mrf.mxu0  ;;  %v67_v13 = vpop.f32.mrf.mxu1 }
  0x84   :  { %v65_v12 = vadd.f32 %v64_v10, %v25_v9  ;;  %v68_v14 = vadd.f32 %v67_v13, %v30_v11 }
  0x86   :  { %73 = vst [vmem:[%s147_s3] sm:$0xff] %v65_v12 }
  0x87   :  { %74 = vst [vmem:[%s147_s3 + $0x8] sm:$0xff] %v68_v14 }
  0x8a   :  { %v70_v16 = vpop.f32.mrf.mxu2 }
  0x8b   :  { %v71_v17 = vadd.f32 %v70_v16, %v35_v15 }
  0x8d   :  { %75 = vst [vmem:[%s147_s3 + $0x10] sm:$0x1f] %v71_v17 }

// kernel: _forward.17
= control target key start
LH: loop header
LB: loop body
LE: loop exit
PB: predicated region body
PF: predicated region fallthrough
CT: control target
= control target key end

     0   :  { %v18_v0 = vlaneseq  ;;  %s333_s0 = inlined_call_operand.vmem [shape: f32[2,7,192], index: 0, kind: input, shape index: {}]   ;;  %s334_s2 = inlined_call_operand.vmem [shape: f32[1,7,192], index: 2, kind: input, shape index: {}]   ;;  %s335_s1 = inlined_call_operand.vmem [shape: f32[1,7,192], index: 1, kind: input, shape index: {}]   ;;  %s336_s3 = inlined_call_operand.vmem [shape: f32[2,7,192], index: 3, kind: output, shape index: {}]  }
   0x1   :  { %v14_v1 = vld [vmem:[%s333_s0] sm:$0x7f]  ;;  %v15_v4 = vld [vmem:[%s333_s0 + $0x8] sm:$0x7f]  ;;  %v16_v6 = vld [vmem:[%s333_s0 + $0x10] sm:$0x7f] }
   0x2   :  { %v196_v2 = vshrl.u32 %v18_v0, 7  ;;  %v145_v3 = vmul.f32 -1.442695, %v14_v1  ;;  %v146_v5 = vmul.f32 -1.442695, %v15_v4 }
   0x3   :  { %v147_v8 = vmul.f32 -1.442695, %v16_v6  ;;  %v17_v9 = vld [vmem:[%s333_s0 + $0x18] sm:$0x7f]  ;;  %v122_v33 = vld [vmem:[%s334_s2] sm:$0x7f] }
   0x4   :  { %vm21_vm0 = vcmp.ge.s32.totalorder %v196_v2, 2  ;;  %vm22_vm1 = vcmp.lt.s32.totalorder %v196_v2, 4  ;;  %149 = vpow2.f32 %v145_v3  ;;  %v148_v12 = vmul.f32 -1.442695, %v17_v9  ;;  %v233_v37 = vld [vmem:[%s334_s2 + $0x8] sm:$0x7f] }
   0x5   :  { %vm206_vm2 = vmand %vm21_vm0, %vm22_vm1  ;;  %151 = vpow2.f32 %v146_v5  ;;  %vm20_vm8 = vcmp.lt.s32.totalorder %v196_v2, 2  ;;  %v112_v62 = vld [vmem:[%s335_s1] sm:$0x7f] }
   0x6   :  { %v100_v10 = vsel %vm206_vm2, %v14_v1, 0.0  ;;  %v101_v11 = vsel %vm206_vm2, %v15_v4, 0.0  ;;  %153 = vpow2.f32 %v147_v8  ;;  %v102_v19 = vsel %vm206_vm2, %v16_v6, 0.0  ;;  %v113_v4 = vld [vmem:[%s335_s1 + $0x8] sm:$0x7f] }
   0x7   :  { %v104_v13 = vmul.f32 1.442695, %v100_v10  ;;  %v106_v14 = vmul.f32 1.442695, %v101_v11  ;;  %155 = vpow2.f32 %v148_v12  ;;  %v103_v21 = vsel %vm206_vm2, %v17_v9, 0.0 }
   0x8   :  { %v108_v24 = vmul.f32 1.442695, %v102_v19  ;;  %v110_v26 = vmul.f32 1.442695, %v103_v21 }
   0x9   :  { %157 = vpow2.f32 %v104_v13 }
   0xa   :  { %v150_v15 = vpop.eup %149  ;;  %159 = vpow2.f32 %v106_v14 }
   0xb   :  { %v152_v16 = vpop.eup %151  ;;  %v36_v17 = vadd.f32 1.0, %v150_v15 }
   0xc   :  { %v37_v18 = vadd.f32 1.0, %v152_v16  ;;  %v154_v20 = vpop.eup %153 }
   0xd   :  { %161 = vrcp.f32 %v36_v17  ;;  %v156_v22 = vpop.eup %155  ;;  %v221_v23 = vadd.f32 1.0, %v154_v20  ;;  %v49_v28 = vand.u32 2147483647, %v36_v17  ;;  %v51_v29 = vand.u32 2147483648, %v36_v17 }
   0xe   :  { %163 = vrcp.f32 %v37_v18  ;;  %v223_v25 = vadd.f32 1.0, %v156_v22  ;;  %v64_v31 = vand.u32 2147483647, %v37_v18  ;;  %v66_v34 = vand.u32 2147483648, %v37_v18 }
   0xf   :  { %v158_v27 = vpop.eup %157  ;;  %165 = vrcp.f32 %v221_v23  ;;  %vm45_vm3 = vweird.f32 %v36_v17  ;;  %vm235_vm4 = vcmp.eq.f32.partialorder %v49_v28, 8.507059e+37  ;;  %v52_v39 = vor.u32 1.1754944e-38, %v51_v29 }
  0x10   :  { %v160_v30 = vpop.eup %159  ;;  %167 = vrcp.f32 %v223_v25  ;;  %vm60_vm5 = vweird.f32 %v37_v18  ;;  %v124_v42 = vmul.f32 %v158_v27, %v122_v33  ;;  %vm239_vm7 = vcmp.eq.f32.partialorder %v64_v31, 8.507059e+37 }
  0x11   :  { %169 = vpow2.f32 %v108_v24  ;;  %v67_v46 = vor.u32 1.1754944e-38, %v66_v34  ;;  %v125_v47 = vmul.f32 %v160_v30, %v233_v37  ;;  %vm75_vm10 = vweird.f32 %v221_v23 }
  0x12   :  { %171 = vpow2.f32 %v110_v26  ;;  %v79_v51 = vand.u32 2147483647, %v221_v23  ;;  %v81_v55 = vand.u32 2147483648, %v221_v23  ;;  %vm90_vm12 = vweird.f32 %v223_v25 }
  0x13   :  { %v162_v32 = vpop.eup %161  ;;  %v96_v61 = vand.u32 2147483648, %v223_v25  ;;  %v94_v1 = vand.u32 2147483647, %v223_v25 }
  0x14   :  { %v164_v35 = vpop.eup %163  ;;  %v41_v36 = vmul.f32 %v162_v32, %v36_v17  ;;  %vm46_vm6 = vweird.f32 %v162_v32  ;;  %vm273_vm0 = vcmp.eq.f32.partialorder %v79_v51, 8.507059e+37  ;;  %v82_v12 = vor.u32 1.1754944e-38, %v81_v55 }
  0x15   :  { %v56_v40 = vmul.f32 %v164_v35, %v37_v18  ;;  %v166_v44 = vpop.eup %165  ;;  %vm61_vm9 = vweird.f32 %v164_v35  ;;  %vm250_vm11 = vmor %vm45_vm3, %vm46_vm6  ;;  %v97_v18 = vor.u32 1.1754944e-38, %v96_v61 }
  0x16   :  { %v42_v41 = vsub.f32 1.0, %v41_v36  ;;  %v168_v48 = vpop.eup %167  ;;  %v71_v50 = vmul.f32 %v166_v44, %v221_v23  ;;  %vm259_vm13 = vmor %vm60_vm5, %vm61_vm9  ;;  %vm76_vm14 = vweird.f32 %v166_v44  ;;  %vm137_vm5 = vcmask 522240  }
  0x17   :  { %v57_v45 = vsub.f32 1.0, %v56_v40  ;;  %v170_v52 = vpop.eup %169  ;;  %v86_v56 = vmul.f32 %v168_v48, %v223_v25  ;;  %vm91_vm15 = vweird.f32 %v168_v48  ;;  %vm283_vm1 = vmor %vm75_vm10, %vm76_vm14 }
  0x18   :  { %v43_v49 = vmul.f32 %v162_v32, %v42_v41  ;;  %v172_v57 = vpop.eup %171  ;;  %v72_v60 = vsub.f32 1.0, %v71_v50  ;;  %v126_v8 = vmul.f32 %v170_v52, %v122_v33  ;;  %vm292_vm3 = vmor %vm90_vm12, %vm91_vm15 }
  0x19   :  { %v58_v54 = vmul.f32 %v164_v35, %v57_v45  ;;  %v87_v0 = vsub.f32 1.0, %v86_v56  ;;  %v127_v25 = vmul.f32 %v172_v57, %v233_v37 }
  0x1a   :  { %v44_v58 = vadd.f32 %v162_v32, %v43_v49  ;;  %v73_v5 = vmul.f32 %v166_v44, %v72_v60 }
  0x1b   :  { %v59_v63 = vadd.f32 %v164_v35, %v58_v54  ;;  %v88_v13 = vmul.f32 %v168_v48, %v87_v0 }
  0x1c   :  { %v48_v3 = vsel %vm250_vm11, %v162_v32, %v44_v58  ;;  %v74_v16 = vadd.f32 %v166_v44, %v73_v5 }
  0x1d   :  { %v53_v9 = vsel %vm235_vm4, %v52_v39, %v48_v3  ;;  %v63_v10 = vsel %vm259_vm13, %v164_v35, %v59_v63  ;;  %v89_v21 = vadd.f32 %v168_v48, %v88_v13  ;;  %vm95_vm4 = vcmp.eq.f32.partialorder %v94_v1, 8.507059e+37 }
  0x1e   :  { %v114_v14 = vadd.f32 %v112_v62, %v53_v9  ;;  %v68_v15 = vsel %vm239_vm7, %v67_v46, %v63_v10  ;;  %v128_v19 = vsel %vm206_vm2, %v124_v42, %v53_v9  ;;  %v78_v24 = vsel %vm283_vm1, %v166_v44, %v74_v16 }
  0x1f   :  { %v115_v20 = vadd.f32 %v113_v4, %v68_v15  ;;  %v129_v23 = vsel %vm206_vm2, %v125_v47, %v68_v15  ;;  %v83_v27 = vsel %vm273_vm0, %v82_v12, %v78_v24  ;;  %v93_v28 = vsel %vm292_vm3, %v168_v48, %v89_v21 }
  0x20   :  { %v118_v22 = vmul.f32 2.0, %v114_v14  ;;  %v116_v30 = vadd.f32 %v112_v62, %v83_v27  ;;  %v98_v31 = vsel %vm95_vm4, %v97_v18, %v93_v28  ;;  %v130_v33 = vsel %vm206_vm2, %v126_v8, %v83_v27 }
  0x21   :  { %v119_v26 = vmul.f32 2.0, %v115_v20  ;;  %v117_v34 = vadd.f32 %v113_v4, %v98_v31  ;;  %v131_v36 = vsel %vm206_vm2, %v127_v25, %v98_v31 }
  0x22   :  { %v132_v29 = vsel %vm20_vm8, %v118_v22, %v128_v19  ;;  %v120_v35 = vmul.f32 2.0, %v116_v30 }
  0x23   :  { %136 = vst [vmem:[%s336_s3] sm:$0x7f] %v132_v29  ;;  %v133_v32 = vsel %vm20_vm8, %v119_v26, %v129_v23  ;;  %v121_v37 = vmul.f32 2.0, %v117_v34 }
  0x24   :  { %138 = vst.msk [vmem:[%s336_s3 + $0x8] sm:$0x7f] %vm137_vm5, %v133_v32  ;;  %v134_v38 = vsel %vm20_vm8, %v120_v35, %v130_v33 }
  0x25   :  { %139 = vst [vmem:[%s336_s3 + $0x10] sm:$0x7f] %v134_v38  ;;  %v135_v39 = vsel %vm20_vm8, %v121_v37, %v131_v36 }
  0x26   :  { %140 = vst.msk [vmem:[%s336_s3 + $0x18] sm:$0x7f] %vm137_vm5, %v135_v39 }

</bundles_post_ra>
